<compile_context>
chip_gen: v6e
topology: v6e:2x2x1
jax: 0.10.0
libtpu: 0.0.40
codegen_flags: <defaults>
</compile_context>

<pallas_src>
from functools import partial
import math

import jax
import jax.numpy as jnp
from jax.experimental import pallas as pl
from jax.experimental.pallas import tpu as pltpu


def _layernorm(z, w, b, eps=1e-5):
    mu = jnp.mean(z, axis=-1, keepdims=True)
    var = jnp.mean((z - mu) ** 2, axis=-1, keepdims=True)
    return (z - mu) * jax.lax.rsqrt(var + eps) * w + b


def block_kernel(x_ref,
                 ln1_w_ref, ln1_b_ref,
                 wqkv_ref, wproj_ref, bproj_ref,
                 ln2_w_ref, ln2_b_ref,
                 wfc1_ref, bfc1_ref,
                 wfc2_ref, bfc2_ref,
                 o_ref,
                 *, num_heads, approx_recip=True):
    f32 = jnp.float32
    bf16 = jnp.bfloat16

    x = x_ref[0]                                   # (N, C) f32
    N, C = x.shape
    H = num_heads
    hd = C // H

    # ---- norm1 (f32 VPU math), single bf16 cast for the MXU ----
    h = _layernorm(x, ln1_w_ref[...], ln1_b_ref[...]).astype(bf16)

    # ---- fused qkv projection: ONE lane-dense (N,C)x(C,3C) matmul.
    # softmax scale is pre-folded into the q third of the weight (wrapper),
    # so no in-kernel scaling is needed.
    qkv = jnp.dot(h, wqkv_ref[...], preferred_element_type=f32)   # (N, 3C) f32
    qkv = qkv.astype(bf16)                         # f32 copy dies immediately

    # Head split: one cheap bf16 (N,C)->(H,N,hd) relayout per tensor.
    def to_heads(t):                               # (N, C) -> (H, N, hd)
        return jnp.transpose(t.reshape(N, H, hd), (1, 0, 2))

    q = to_heads(qkv[:, :C])
    k = to_heads(qkv[:, C:2 * C])
    v = to_heads(qkv[:, 2 * C:])

    # ---- attention: head-batched dots, f32 accumulation, f32 softmax ----
    # TODO(synk): for long sequences (N >= ~512) switch to a q-tiled online
    # (flash-style) softmax so the (H, N, N) buffers don't dominate VMEM
    # (v7x: 64 MiB/TC); and on v6e/v7x the exp could run in bf16 on the EUP.
    s = jnp.einsum('hqd,hkd->hqk', q, k, preferred_element_type=f32)
    s = s - jnp.max(s, axis=-1, keepdims=True)
    p = jnp.exp(s)                                 # f32 (v5e has no bf16 EUP)
    denom = jnp.sum(p, axis=-1, keepdims=True)
    if approx_recip:
        p = p * pl.reciprocal(denom, approx=True)  # EUP slot, ~free
    else:
        p = p / denom
    o = jnp.einsum('hqk,hkd->hqd', p.astype(bf16), v,
                   preferred_element_type=f32)     # (H, N, hd) f32

    # ---- merge heads, then ONE lane-dense (N,C)x(C,C) output projection ----
    om = jnp.transpose(o, (1, 0, 2)).reshape(N, C).astype(bf16)
    attn = jnp.dot(om, wproj_ref[...], preferred_element_type=f32) + bproj_ref[...]
    y = x + attn                                   # residual 1

    # ---- norm2 + MLP (GELU exact, erf-based, f32) ----
    h2 = _layernorm(y, ln2_w_ref[...], ln2_b_ref[...]).astype(bf16)
    z = jnp.dot(h2, wfc1_ref[...], preferred_element_type=f32) + bfc1_ref[...]
    z = 0.5 * z * (1.0 + jax.lax.erf(z * (1.0 / math.sqrt(2.0))))
    z = jnp.dot(z.astype(bf16), wfc2_ref[...],
                preferred_element_type=f32) + bfc2_ref[...]

    o_ref[0] = (y + z).astype(o_ref.dtype)         # residual 2


def pack_params(params, dim, num_heads):
    """One-time weight restructuring. Call ONCE outside any inference loop:
    folds the softmax scale into the q columns of the fused qkv weight and
    casts matmul weights to bf16 (biases / LN params stay f32)."""
    C = dim
    hd = C // num_heads
    scale = hd ** -0.5
    bf16 = jnp.bfloat16

    (ln1_w, ln1_b, wqkv, wproj, bproj,
     ln2_w, ln2_b, wfc1, bfc1, wfc2, bfc2) = params

    wqkv_s = jnp.concatenate([wqkv[:, :C] * scale, wqkv[:, C:]], axis=1)

    return (ln1_w, ln1_b,
            wqkv_s.astype(bf16),
            wproj.astype(bf16), bproj,
            ln2_w, ln2_b,
            wfc1.astype(bf16), bfc1,
            wfc2.astype(bf16), bfc2)


def vit_block(x, packed_params, *, num_heads):
    B, N, C = x.shape
    H = num_heads
    hd = C // H
    weights = packed_params
    hidden = weights[7].shape[1]                   # wfc1: (C, hidden)

    # Grid-invariant weight blocks: single-buffered (never change across grid
    # steps).  Falls back to default double-buffering on older Pallas.
    def full(arr):
        nd = arr.ndim
        idx = lambda b, _nd=nd: (0,) * _nd
        try:
            return pl.BlockSpec(arr.shape, idx, pipeline_mode=pl.Buffered(1))
        except (TypeError, AttributeError):
            return pl.BlockSpec(arr.shape, idx)

    param_bytes = int(sum(int(a.size) * a.dtype.itemsize for a in weights))

    # Advisory cost estimate for XLA's scheduler.
    flops = int(2 * B * N * C * (4 * C + 2 * hidden) + 4 * B * H * N * N * hd)
    transcendentals = int(B * (H * N * N + N * hidden + 4 * N))
    bytes_accessed = int(param_bytes + 2 * x.size * x.dtype.itemsize)

    # VMEM budget: single-buffered weights + double-buffered x/out blocks +
    # activation scratch, capped generation-aware (v7x: 64 MiB per TC).
    act_bytes = 4 * (2 * H * N * N + 2 * N * hidden + 12 * N * C)
    need = param_bytes + 2 * (2 * N * C * 4) + act_bytes
    try:
        phys_vmem = int(pltpu.get_tpu_info().vmem_capacity_bytes)
    except Exception:
        phys_vmem = 128 * 2 ** 20
    vmem_limit = int(min(int(phys_vmem * 0.85), max(32 * 2 ** 20, need)))

    kernel = partial(block_kernel, num_heads=num_heads)

    return pl.pallas_call(
        kernel,
        out_shape=jax.ShapeDtypeStruct((B, N, C), x.dtype),
        grid_spec=pltpu.PrefetchScalarGridSpec(
            num_scalar_prefetch=0,
            grid=(B,),  # B >= 2 keeps both v7x TensorCores busy ("parallel")
            in_specs=[pl.BlockSpec((1, N, C), lambda b: (b, 0, 0))]
                     + [full(w) for w in weights],
            out_specs=pl.BlockSpec((1, N, C), lambda b: (b, 0, 0)),
        ),
        compiler_params=pltpu.CompilerParams(
            dimension_semantics=("parallel",),
            vmem_limit_bytes=vmem_limit),
        cost_estimate=pl.CostEstimate(
            flops=flops,
            transcendentals=transcendentals,
            bytes_accessed=bytes_accessed),
    )(x, *weights)


def ref_block(x, params, *, num_heads):
    """Pure-JAX f32 reference (mirrors the PyTorch Block in eval mode)."""
    B, N, C = x.shape
    hd = C // num_heads
    scale = hd ** -0.5
    (ln1_w, ln1_b, wqkv, wproj, bproj,
     ln2_w, ln2_b, wfc1, bfc1, wfc2, bfc2) = params

    def ln(z, w, b, eps=1e-5):
        mu = z.mean(-1, keepdims=True)
        var = ((z - mu) ** 2).mean(-1, keepdims=True)
        return (z - mu) / jnp.sqrt(var + eps) * w + b

    h = ln(x, ln1_w[0], ln1_b[0])
    qkv = h @ wqkv                                    # (B, N, 3C)
    qkv = qkv.reshape(B, N, 3, num_heads, hd).transpose(2, 0, 3, 1, 4)
    q, k, v = qkv[0], qkv[1], qkv[2]                  # (B, H, N, hd)
    s = jnp.einsum('bhqd,bhkd->bhqk', q, k) * scale
    p = jax.nn.softmax(s, axis=-1)
    o = jnp.einsum('bhqk,bhkd->bhqd', p, v)
    o = o.transpose(0, 2, 1, 3).reshape(B, N, C)
    o = o @ wproj + bproj[0]
    y = x + o

    h2 = ln(y, ln2_w[0], ln2_b[0])
    z = h2 @ wfc1 + bfc1[0]
    z = 0.5 * z * (1.0 + jax.lax.erf(z / jnp.sqrt(2.0)))
    z = z @ wfc2 + bfc2[0]
    return y + z


if __name__ == "__main__":
    # Small but TPU-layout-friendly shapes (C multiple of 128, N multiple of 8)
    # so the real (8,128)-tiled code paths are exercised.
    B, N, C = 2, 16, 128
    num_heads = 4
    hidden = int(C * 4.0)

    key = jax.random.PRNGKey(0)
    ks = jax.random.split(key, 8)

    x = jax.random.normal(ks[0], (B, N, C), jnp.float32)

    ln1_w = jnp.ones((1, C), jnp.float32)
    ln1_b = jnp.zeros((1, C), jnp.float32)
    ln2_w = jnp.ones((1, C), jnp.float32)
    ln2_b = jnp.zeros((1, C), jnp.float32)
    # Linear weights stored as (in, out) == PyTorch weight.T  (qkv_bias=False)
    wqkv = 0.05 * jax.random.normal(ks[1], (C, 3 * C), jnp.float32)
    wproj = 0.05 * jax.random.normal(ks[2], (C, C), jnp.float32)
    bproj = 0.05 * jax.random.normal(ks[3], (1, C), jnp.float32)
    wfc1 = 0.05 * jax.random.normal(ks[4], (C, hidden), jnp.float32)
    bfc1 = 0.05 * jax.random.normal(ks[5], (1, hidden), jnp.float32)
    wfc2 = 0.05 * jax.random.normal(ks[6], (hidden, C), jnp.float32)
    bfc2 = 0.05 * jax.random.normal(ks[7], (1, C), jnp.float32)

    params = (ln1_w, ln1_b, wqkv, wproj, bproj,
              ln2_w, ln2_b, wfc1, bfc1, wfc2, bfc2)

    # One-time weight restructuring (would be hoisted out of an inference loop).
    packed = pack_params(params, C, num_heads)

    out = jax.block_until_ready(vit_block(x, packed, num_heads=num_heads))
    ref = jax.block_until_ready(ref_block(x, params, num_heads=num_heads))

    assert out.shape == (B, N, C)
    err = float(jnp.max(jnp.abs(out - ref)))
    # bf16 MXU operands with f32 accumulation -> relaxed tolerance vs pure f32.
    assert jnp.allclose(out, ref, atol=3e-2, rtol=3e-2), f"max err {err}"

    print("KERNEL_OK")
</pallas_src>

<mosaic_0001>
module attributes {stable_mosaic.version = 11 : i64} {
  func.func @block_kernel(%arg0: i32, %arg1: memref<1x16x128xf32, #tpu.memory_space<vmem>>, %arg2: memref<1x128xf32, #tpu.memory_space<vmem>>, %arg3: memref<1x128xf32, #tpu.memory_space<vmem>>, %arg4: memref<128x384xbf16, #tpu.memory_space<vmem>>, %arg5: memref<128x128xbf16, #tpu.memory_space<vmem>>, %arg6: memref<1x128xf32, #tpu.memory_space<vmem>>, %arg7: memref<1x128xf32, #tpu.memory_space<vmem>>, %arg8: memref<1x128xf32, #tpu.memory_space<vmem>>, %arg9: memref<128x512xbf16, #tpu.memory_space<vmem>>, %arg10: memref<1x512xf32, #tpu.memory_space<vmem>>, %arg11: memref<512x128xbf16, #tpu.memory_space<vmem>>, %arg12: memref<1x128xf32, #tpu.memory_space<vmem>>, %arg13: memref<1x16x128xf32, #tpu.memory_space<vmem>>) attributes {dimension_semantics = [#tpu.dimension_semantics<parallel>], iteration_bounds = array<i64: 2>, scalar_prefetch = 0 : i64, scratch_operands = 0 : i64, tpu.core_type = #tpu.core_type<tc>, window_params = [{transform_indices = @transform_0, window_bounds = array<i64: 1, 16, 128>}, {pipeline_mode = #tpu.pipeline_mode<synchronous>, transform_indices = @transform_1, window_bounds = array<i64: 1, 128>}, {pipeline_mode = #tpu.pipeline_mode<synchronous>, transform_indices = @transform_2, window_bounds = array<i64: 1, 128>}, {pipeline_mode = #tpu.pipeline_mode<synchronous>, transform_indices = @transform_3, window_bounds = array<i64: 128, 384>}, {pipeline_mode = #tpu.pipeline_mode<synchronous>, transform_indices = @transform_4, window_bounds = array<i64: 128, 128>}, {pipeline_mode = #tpu.pipeline_mode<synchronous>, transform_indices = @transform_5, window_bounds = array<i64: 1, 128>}, {pipeline_mode = #tpu.pipeline_mode<synchronous>, transform_indices = @transform_6, window_bounds = array<i64: 1, 128>}, {pipeline_mode = #tpu.pipeline_mode<synchronous>, transform_indices = @transform_7, window_bounds = array<i64: 1, 128>}, {pipeline_mode = #tpu.pipeline_mode<synchronous>, transform_indices = @transform_8, window_bounds = array<i64: 128, 512>}, {pipeline_mode = #tpu.pipeline_mode<synchronous>, transform_indices = @transform_9, window_bounds = array<i64: 1, 512>}, {pipeline_mode = #tpu.pipeline_mode<synchronous>, transform_indices = @transform_10, window_bounds = array<i64: 512, 128>}, {pipeline_mode = #tpu.pipeline_mode<synchronous>, transform_indices = @transform_11, window_bounds = array<i64: 1, 128>}, {transform_indices = @transform_12, window_bounds = array<i64: 1, 16, 128>}]} {
    %c0 = arith.constant 0 : index
    %c0_0 = arith.constant 0 : index
    %c0_1 = arith.constant 0 : index
    %0 = vector.load %arg1[%c0, %c0_0, %c0_1] : memref<1x16x128xf32, #tpu.memory_space<vmem>>, vector<1x16x128xf32>
    %1 = vector.shape_cast %0 : vector<1x16x128xf32> to vector<16x128xf32>
    %c0_2 = arith.constant 0 : index
    %c0_3 = arith.constant 0 : index
    %2 = vector.load %arg2[%c0_2, %c0_3] : memref<1x128xf32, #tpu.memory_space<vmem>>, vector<1x128xf32>
    %c0_4 = arith.constant 0 : index
    %c0_5 = arith.constant 0 : index
    %3 = vector.load %arg3[%c0_4, %c0_5] : memref<1x128xf32, #tpu.memory_space<vmem>>, vector<1x128xf32>
    %cst = arith.constant dense<0.000000e+00> : vector<16xf32>
    %4 = vector.multi_reduction <add>, %1, %cst [1] : vector<16x128xf32> to vector<16xf32>
    %5 = vector.shape_cast %4 : vector<16xf32> to vector<16x1xf32>
    %cst_6 = arith.constant 1.280000e+02 : f32
    %6 = vector.broadcast %cst_6 : f32 to vector<16x1xf32>
    %7 = arith.divf %5, %6 : vector<16x1xf32>
    %8 = vector.broadcast %7 : vector<16x1xf32> to vector<16x128xf32>
    %9 = arith.subf %1, %8 : vector<16x128xf32>
    %10 = arith.mulf %9, %9 : vector<16x128xf32>
    %cst_7 = arith.constant dense<0.000000e+00> : vector<16xf32>
    %11 = vector.multi_reduction <add>, %10, %cst_7 [1] : vector<16x128xf32> to vector<16xf32>
    %12 = vector.shape_cast %11 : vector<16xf32> to vector<16x1xf32>
    %cst_8 = arith.constant 1.280000e+02 : f32
    %13 = vector.broadcast %cst_8 : f32 to vector<16x1xf32>
    %14 = arith.divf %12, %13 : vector<16x1xf32>
    %15 = vector.broadcast %7 : vector<16x1xf32> to vector<16x128xf32>
    %16 = arith.subf %1, %15 : vector<16x128xf32>
    %cst_9 = arith.constant 9.99999974E-6 : f32
    %17 = vector.broadcast %cst_9 : f32 to vector<16x1xf32>
    %18 = arith.addf %14, %17 : vector<16x1xf32>
    %19 = math.rsqrt %18 : vector<16x1xf32>
    %20 = vector.broadcast %19 : vector<16x1xf32> to vector<16x128xf32>
    %21 = arith.mulf %16, %20 : vector<16x128xf32>
    %22 = vector.broadcast %2 : vector<1x128xf32> to vector<16x128xf32>
    %23 = arith.mulf %21, %22 : vector<16x128xf32>
    %24 = vector.broadcast %3 : vector<1x128xf32> to vector<16x128xf32>
    %25 = arith.addf %23, %24 : vector<16x128xf32>
    %26 = arith.truncf %25 : vector<16x128xf32> to vector<16x128xbf16>
    %c0_10 = arith.constant 0 : index
    %c0_11 = arith.constant 0 : index
    %27 = vector.load %arg4[%c0_10, %c0_11] : memref<128x384xbf16, #tpu.memory_space<vmem>>, vector<128x384xbf16>
    %cst_12 = arith.constant dense<0.000000e+00> : vector<16x384xf32>
    %28 = tpu.matmul %26, %27, %cst_12 {dimension_numbers = #tpu.dot_dimension_numbers<[1], [0], [0], [1], [0, 0, 1, 1], [], []>} : vector<16x128xbf16>, vector<128x384xbf16>, vector<16x384xf32> -> vector<16x384xf32>
    %29 = arith.truncf %28 : vector<16x384xf32> to vector<16x384xbf16>
    %30 = vector.extract_strided_slice %29 {offsets = [0, 0], sizes = [16, 128], strides = [1, 1]} : vector<16x384xbf16> to vector<16x128xbf16>
    %31 = vector.shape_cast %30 : vector<16x128xbf16> to vector<16x4x32xbf16>
    %32 = tpu.transpose %31, [1, 0, 2] : vector<16x4x32xbf16> -> vector<4x16x32xbf16>
    %33 = vector.extract_strided_slice %29 {offsets = [0, 128], sizes = [16, 128], strides = [1, 1]} : vector<16x384xbf16> to vector<16x128xbf16>
    %34 = vector.shape_cast %33 : vector<16x128xbf16> to vector<16x4x32xbf16>
    %35 = tpu.transpose %34, [1, 0, 2] : vector<16x4x32xbf16> -> vector<4x16x32xbf16>
    %36 = vector.extract_strided_slice %29 {offsets = [0, 256], sizes = [16, 128], strides = [1, 1]} : vector<16x384xbf16> to vector<16x128xbf16>
    %37 = vector.shape_cast %36 : vector<16x128xbf16> to vector<16x4x32xbf16>
    %38 = tpu.transpose %37, [1, 0, 2] : vector<16x4x32xbf16> -> vector<4x16x32xbf16>
    "tpu.trace_start"() <{level = 10 : i32, message = "hqd,hkd->hqk"}> : () -> ()
    %cst_13 = arith.constant dense<0.000000e+00> : vector<4x16x16xf32>
    %39 = tpu.matmul %32, %35, %cst_13 {dimension_numbers = #tpu.dot_dimension_numbers<[2], [2], [1], [1], [0, 0, 0, 1, 1, 1], [0], [0]>} : vector<4x16x32xbf16>, vector<4x16x32xbf16>, vector<4x16x16xf32> -> vector<4x16x16xf32>
    "tpu.trace_stop"() : () -> ()
    %cst_14 = arith.constant dense<0xFF800000> : vector<4x16xf32>
    %40 = vector.multi_reduction <maximumf>, %39, %cst_14 [2] : vector<4x16x16xf32> to vector<4x16xf32>
    %41 = vector.shape_cast %40 : vector<4x16xf32> to vector<4x16x1xf32>
    %42 = vector.broadcast %41 : vector<4x16x1xf32> to vector<4x16x16xf32>
    %43 = arith.subf %39, %42 : vector<4x16x16xf32>
    %44 = math.exp %43 : vector<4x16x16xf32>
    %cst_15 = arith.constant dense<0.000000e+00> : vector<4x16xf32>
    %45 = vector.multi_reduction <add>, %44, %cst_15 [2] : vector<4x16x16xf32> to vector<4x16xf32>
    %46 = vector.shape_cast %45 : vector<4x16xf32> to vector<4x16x1xf32>
    %47 = tpu.reciprocal %46 {approx = true} : vector<4x16x1xf32> -> vector<4x16x1xf32>
    %48 = vector.broadcast %47 : vector<4x16x1xf32> to vector<4x16x16xf32>
    %49 = arith.mulf %44, %48 : vector<4x16x16xf32>
    %50 = arith.truncf %49 : vector<4x16x16xf32> to vector<4x16x16xbf16>
    "tpu.trace_start"() <{level = 10 : i32, message = "hqk,hkd->hqd"}> : () -> ()
    %cst_16 = arith.constant dense<0.000000e+00> : vector<4x16x32xf32>
    %51 = tpu.matmul %50, %38, %cst_16 {dimension_numbers = #tpu.dot_dimension_numbers<[2], [1], [1], [2], [0, 0, 0, 1, 1, 2], [0], [0]>} : vector<4x16x16xbf16>, vector<4x16x32xbf16>, vector<4x16x32xf32> -> vector<4x16x32xf32>
    "tpu.trace_stop"() : () -> ()
    %52 = tpu.transpose %51, [1, 0, 2] : vector<4x16x32xf32> -> vector<16x4x32xf32>
    %53 = vector.shape_cast %52 : vector<16x4x32xf32> to vector<16x128xf32>
    %54 = arith.truncf %53 : vector<16x128xf32> to vector<16x128xbf16>
    %c0_17 = arith.constant 0 : index
    %c0_18 = arith.constant 0 : index
    %55 = vector.load %arg5[%c0_17, %c0_18] : memref<128x128xbf16, #tpu.memory_space<vmem>>, vector<128x128xbf16>
    %cst_19 = arith.constant dense<0.000000e+00> : vector<16x128xf32>
    %56 = tpu.matmul %54, %55, %cst_19 {dimension_numbers = #tpu.dot_dimension_numbers<[1], [0], [0], [1], [0, 0, 1, 1], [], []>} : vector<16x128xbf16>, vector<128x128xbf16>, vector<16x128xf32> -> vector<16x128xf32>
    %c0_20 = arith.constant 0 : index
    %c0_21 = arith.constant 0 : index
    %57 = vector.load %arg6[%c0_20, %c0_21] : memref<1x128xf32, #tpu.memory_space<vmem>>, vector<1x128xf32>
    %58 = vector.broadcast %57 : vector<1x128xf32> to vector<16x128xf32>
    %59 = arith.addf %56, %58 : vector<16x128xf32>
    %60 = arith.addf %1, %59 : vector<16x128xf32>
    %c0_22 = arith.constant 0 : index
    %c0_23 = arith.constant 0 : index
    %61 = vector.load %arg7[%c0_22, %c0_23] : memref<1x128xf32, #tpu.memory_space<vmem>>, vector<1x128xf32>
    %c0_24 = arith.constant 0 : index
    %c0_25 = arith.constant 0 : index
    %62 = vector.load %arg8[%c0_24, %c0_25] : memref<1x128xf32, #tpu.memory_space<vmem>>, vector<1x128xf32>
    %cst_26 = arith.constant dense<0.000000e+00> : vector<16xf32>
    %63 = vector.multi_reduction <add>, %60, %cst_26 [1] : vector<16x128xf32> to vector<16xf32>
    %64 = vector.shape_cast %63 : vector<16xf32> to vector<16x1xf32>
    %cst_27 = arith.constant 1.280000e+02 : f32
    %65 = vector.broadcast %cst_27 : f32 to vector<16x1xf32>
    %66 = arith.divf %64, %65 : vector<16x1xf32>
    %67 = vector.broadcast %66 : vector<16x1xf32> to vector<16x128xf32>
    %68 = arith.subf %60, %67 : vector<16x128xf32>
    %69 = arith.mulf %68, %68 : vector<16x128xf32>
    %cst_28 = arith.constant dense<0.000000e+00> : vector<16xf32>
    %70 = vector.multi_reduction <add>, %69, %cst_28 [1] : vector<16x128xf32> to vector<16xf32>
    %71 = vector.shape_cast %70 : vector<16xf32> to vector<16x1xf32>
    %cst_29 = arith.constant 1.280000e+02 : f32
    %72 = vector.broadcast %cst_29 : f32 to vector<16x1xf32>
    %73 = arith.divf %71, %72 : vector<16x1xf32>
    %74 = vector.broadcast %66 : vector<16x1xf32> to vector<16x128xf32>
    %75 = arith.subf %60, %74 : vector<16x128xf32>
    %cst_30 = arith.constant 9.99999974E-6 : f32
    %76 = vector.broadcast %cst_30 : f32 to vector<16x1xf32>
    %77 = arith.addf %73, %76 : vector<16x1xf32>
    %78 = math.rsqrt %77 : vector<16x1xf32>
    %79 = vector.broadcast %78 : vector<16x1xf32> to vector<16x128xf32>
    %80 = arith.mulf %75, %79 : vector<16x128xf32>
    %81 = vector.broadcast %61 : vector<1x128xf32> to vector<16x128xf32>
    %82 = arith.mulf %80, %81 : vector<16x128xf32>
    %83 = vector.broadcast %62 : vector<1x128xf32> to vector<16x128xf32>
    %84 = arith.addf %82, %83 : vector<16x128xf32>
    %85 = arith.truncf %84 : vector<16x128xf32> to vector<16x128xbf16>
    %c0_31 = arith.constant 0 : index
    %c0_32 = arith.constant 0 : index
    %86 = vector.load %arg9[%c0_31, %c0_32] : memref<128x512xbf16, #tpu.memory_space<vmem>>, vector<128x512xbf16>
    %cst_33 = arith.constant dense<0.000000e+00> : vector<16x512xf32>
    %87 = tpu.matmul %85, %86, %cst_33 {dimension_numbers = #tpu.dot_dimension_numbers<[1], [0], [0], [1], [0, 0, 1, 1], [], []>} : vector<16x128xbf16>, vector<128x512xbf16>, vector<16x512xf32> -> vector<16x512xf32>
    %c0_34 = arith.constant 0 : index
    %c0_35 = arith.constant 0 : index
    %88 = vector.load %arg10[%c0_34, %c0_35] : memref<1x512xf32, #tpu.memory_space<vmem>>, vector<1x512xf32>
    %89 = vector.broadcast %88 : vector<1x512xf32> to vector<16x512xf32>
    %90 = arith.addf %87, %89 : vector<16x512xf32>
    %cst_36 = arith.constant 5.000000e-01 : f32
    %91 = vector.broadcast %cst_36 : f32 to vector<16x512xf32>
    %92 = arith.mulf %91, %90 : vector<16x512xf32>
    %cst_37 = arith.constant 0.707106769 : f32
    %93 = vector.broadcast %cst_37 : f32 to vector<16x512xf32>
    %94 = arith.mulf %90, %93 : vector<16x512xf32>
    %95 = math.erf %94 : vector<16x512xf32>
    %cst_38 = arith.constant 1.000000e+00 : f32
    %96 = vector.broadcast %cst_38 : f32 to vector<16x512xf32>
    %97 = arith.addf %96, %95 : vector<16x512xf32>
    %98 = arith.mulf %92, %97 : vector<16x512xf32>
    %99 = arith.truncf %98 : vector<16x512xf32> to vector<16x512xbf16>
    %c0_39 = arith.constant 0 : index
    %c0_40 = arith.constant 0 : index
    %100 = vector.load %arg11[%c0_39, %c0_40] : memref<512x128xbf16, #tpu.memory_space<vmem>>, vector<512x128xbf16>
    %cst_41 = arith.constant dense<0.000000e+00> : vector<16x128xf32>
    %101 = tpu.matmul %99, %100, %cst_41 {dimension_numbers = #tpu.dot_dimension_numbers<[1], [0], [0], [1], [0, 0, 1, 1], [], []>} : vector<16x512xbf16>, vector<512x128xbf16>, vector<16x128xf32> -> vector<16x128xf32>
    %c0_42 = arith.constant 0 : index
    %c0_43 = arith.constant 0 : index
    %102 = vector.load %arg12[%c0_42, %c0_43] : memref<1x128xf32, #tpu.memory_space<vmem>>, vector<1x128xf32>
    %103 = vector.broadcast %102 : vector<1x128xf32> to vector<16x128xf32>
    %104 = arith.addf %101, %103 : vector<16x128xf32>
    %105 = arith.addf %60, %104 : vector<16x128xf32>
    %c0_44 = arith.constant 0 : index
    %c0_45 = arith.constant 0 : index
    %c0_46 = arith.constant 0 : index
    %106 = vector.load %arg13[%c0_44, %c0_45, %c0_46] : memref<1x16x128xf32, #tpu.memory_space<vmem>>, vector<1x16x128xf32>
    %107 = vector.shape_cast %106 : vector<1x16x128xf32> to vector<16x128xf32>
    %108 = vector.shape_cast %105 : vector<16x128xf32> to vector<1x16x128xf32>
    tpu.vector_store %arg13[%c0_44, %c0_45, %c0_46], %108 {strides = array<i32>} : memref<1x16x128xf32, #tpu.memory_space<vmem>>, vector<1x16x128xf32>,
    return
  }
  func.func @transform_0(%arg0: i32) -> (i32, i32, i32) {
    %c0_i32 = arith.constant 0 : i32
    %c0_i32_0 = arith.constant 0 : i32
    %c0_i32_1 = arith.constant 0 : i32
    return %arg0, %c0_i32, %c0_i32_0 : i32, i32, i32
  }
  func.func @transform_1(%arg0: i32) -> (i32, i32) {
    %c0_i32 = arith.constant 0 : i32
    %c0_i32_0 = arith.constant 0 : i32
    %c0_i32_1 = arith.constant 0 : i32
    return %c0_i32, %c0_i32_0 : i32, i32
  }
  func.func @transform_2(%arg0: i32) -> (i32, i32) {
    %c0_i32 = arith.constant 0 : i32
    %c0_i32_0 = arith.constant 0 : i32
    %c0_i32_1 = arith.constant 0 : i32
    return %c0_i32, %c0_i32_0 : i32, i32
  }
  func.func @transform_3(%arg0: i32) -> (i32, i32) {
    %c0_i32 = arith.constant 0 : i32
    %c0_i32_0 = arith.constant 0 : i32
    %c0_i32_1 = arith.constant 0 : i32
    return %c0_i32, %c0_i32_0 : i32, i32
  }
  func.func @transform_4(%arg0: i32) -> (i32, i32) {
    %c0_i32 = arith.constant 0 : i32
    %c0_i32_0 = arith.constant 0 : i32
    %c0_i32_1 = arith.constant 0 : i32
    return %c0_i32, %c0_i32_0 : i32, i32
  }
  func.func @transform_5(%arg0: i32) -> (i32, i32) {
    %c0_i32 = arith.constant 0 : i32
    %c0_i32_0 = arith.constant 0 : i32
    %c0_i32_1 = arith.constant 0 : i32
    return %c0_i32, %c0_i32_0 : i32, i32
  }
  func.func @transform_6(%arg0: i32) -> (i32, i32) {
    %c0_i32 = arith.constant 0 : i32
    %c0_i32_0 = arith.constant 0 : i32
    %c0_i32_1 = arith.constant 0 : i32
    return %c0_i32, %c0_i32_0 : i32, i32
  }
  func.func @transform_7(%arg0: i32) -> (i32, i32) {
    %c0_i32 = arith.constant 0 : i32
    %c0_i32_0 = arith.constant 0 : i32
    %c0_i32_1 = arith.constant 0 : i32
    return %c0_i32, %c0_i32_0 : i32, i32
  }
  func.func @transform_8(%arg0: i32) -> (i32, i32) {
    %c0_i32 = arith.constant 0 : i32
    %c0_i32_0 = arith.constant 0 : i32
    %c0_i32_1 = arith.constant 0 : i32
    return %c0_i32, %c0_i32_0 : i32, i32
  }
  func.func @transform_9(%arg0: i32) -> (i32, i32) {
    %c0_i32 = arith.constant 0 : i32
    %c0_i32_0 = arith.constant 0 : i32
    %c0_i32_1 = arith.constant 0 : i32
    return %c0_i32, %c0_i32_0 : i32, i32
  }
  func.func @transform_10(%arg0: i32) -> (i32, i32) {
    %c0_i32 = arith.constant 0 : i32
    %c0_i32_0 = arith.constant 0 : i32
    %c0_i32_1 = arith.constant 0 : i32
    return %c0_i32, %c0_i32_0 : i32, i32
  }
  func.func @transform_11(%arg0: i32) -> (i32, i32) {
    %c0_i32 = arith.constant 0 : i32
    %c0_i32_0 = arith.constant 0 : i32
    %c0_i32_1 = arith.constant 0 : i32
    return %c0_i32, %c0_i32_0 : i32, i32
  }
  func.func @transform_12(%arg0: i32) -> (i32, i32, i32) {
    %c0_i32 = arith.constant 0 : i32
    %c0_i32_0 = arith.constant 0 : i32
    %c0_i32_1 = arith.constant 0 : i32
    return %arg0, %c0_i32, %c0_i32_0 : i32, i32, i32
  }
}

</mosaic_0001>

<bundles_post_ra>
// kernel: tpu_custom_call.1
= control target key start
LH: loop header
LB: loop body
LE: loop exit
PB: predicated region body
PF: predicated region fallthrough
CT: control target
= control target key end

     0   :  { %s4789_s0 = inlined_call_operand.hbm [shape: f32[2,16,128], index: 0, kind: input, shape index: {}]   ;;  %s4790_s1 = inlined_call_operand.vmem [shape: f32[1,128], index: 1, kind: input, shape index: {}]   ;;  %s4791_s2 = inlined_call_operand.vmem [shape: f32[1,128], index: 2, kind: input, shape index: {}]   ;;  %s4792_s3 = inlined_call_operand.hbm [shape: bf16[128,384], index: 3, kind: input, shape index: {}]   ;;  %s4793_s4 = inlined_call_operand.hbm [shape: bf16[128,128], index: 4, kind: input, shape index: {}]   ;;  %s4794_s5 = inlined_call_operand.vmem [shape: f32[1,128], index: 5, kind: input, shape index: {}]   ;;  %s4795_s6 = inlined_call_operand.vmem [shape: f32[1,128], index: 6, kind: input, shape index: {}]   ;;  %s4796_s7 = inlined_call_operand.vmem [shape: f32[1,128], index: 7, kind: input, shape index: {}]   ;;  %s4797_s8 = inlined_call_operand.hbm [shape: bf16[128,512], index: 8, kind: input, shape index: {}]   ;;  %s4798_s9 = inlined_call_operand.vmem [shape: f32[1,512], index: 9, kind: input, shape index: {}]   ;;  %s4799_s10 = inlined_call_operand.hbm [shape: bf16[512,128], index: 10, kind: input, shape index: {}]   ;;  %s4800_s11 = inlined_call_operand.vmem [shape: f32[1,128], index: 11, kind: input, shape index: {}]   ;;  %s4801_s12 = inlined_call_operand.hbm [shape: f32[2,16,128], index: 12, kind: output, shape index: {}]  }
   0x1   :  { %4808 = sst [smem:[#allocation18_spill]] %s4792_s3 }
   0x2   :  { %4809 = sst [smem:[#allocation19_spill]] %s4793_s4 }
   0x3   :  { %4810 = sst [smem:[#allocation20_spill]] %s4797_s8 }
   0x4   :  { %4811 = sst [smem:[#allocation21_spill]] %s4799_s10 }
   0x5   :  { %17 = vsyncpa [#allocation3], 0 }
   0x6   :  { %19 = vsyncpa [#allocation3 + $0x1], 0 }
   0x7   :  { %20 = vsyncpa [#allocation6], 0 }
   0x8   :  { %21 = vsyncpa [#allocation9], 0 }
   0x9   :  { %22 = vsyncpa [#allocation4], 0 }
   0xa   :  { %24 = vsyncpa [#allocation4 + $0x1], 0  ;;  %s4238_s21 = smov 0   ;;  %s4240_s22 = smov 0  }
   0xb   :  { %s4242_s23 = smov 0   ;;  %s4244_s24 = smov 0  }
   0xc LB: > { %4812 = sst [smem:[#allocation16_spill]] %s4135_s21  ;;  %s4259_s25 = sadd.s32 4294967295, %s4147_s24   ;;  %s4147_s24 = sphi %s4244_s24, %s4839_s24   ;;  %s4143_s23 = sphi %s4242_s23, %s4838_s23   ;;  %s4139_s22 = sphi %s4240_s22, %s4837_s22   ;;  %s4135_s21 = sphi %s4238_s21, %s4836_s21  }
   0xd   : > { %s3329_s26 = sadd.s32 4294967294, %s4147_s24   ;;  %p50_p0 = scmp.ne.s32.totalorder %s4139_s22, %s4135_s21 }
   0xe   : > { %p4802_p1 = scmp.eq.s32.totalorder %s4259_s25, 0  ;;  %p311_p3 = scmp.eq.s32.totalorder %s3329_s26, 1 }
   0xf   : > { %p3330_p5 = scmp.ge.s32.totalorder %s4147_s24, 1  ;;  %p318_p7 = scmp.lt.s32.totalorder %s4147_s24, 3 }
  0x10   : > { %p4268_p4 = por %p4802_p1, %p50_p0  ;;  %p4273_p6 = por %p311_p3, %p50_p0 }
  0x11   : > { %p4278_p8 = pnand %p3330_p5, %p318_p7  ;;  %s4149_s30 = smov [#allocation5]  }
  0x12   : > { %s4813_s27 = scalar_select %p4268_p4, 1, 0 }
  0x13   : > { %s4814_s28 = scalar_select %p4273_p6, 1, 0 }
  0x14   : > { %s4816_s29 = scalar_select %p4278_p8, 1, 0 }
  0x15   : > { %4815 = sst [smem:[#allocation17_spill]] %s4814_s28  ;;  %s336_s13 = sshll.u32 %s4149_s30, 4  ;;  %s337_s13 = int_to_ptr.vmem [resolvable:$true] %s336_s13 }
  0x16   : > { %p3665_p9 = pneg %p4278_p8  ;;  %s4150_s15 = smov [#allocation8]  }
  0x17   : > { %s371_s16 = sshll.u32 %s4150_s15, 4  ;;  %s3954_s17 = scalar_lea.vmem %s337_s13, 3072  ;;  %s372_s16 = int_to_ptr.vmem [resolvable:$true] %s371_s16 }
  0x18   : > { %p4287_p11 = pnand %p3665_p9, %p4802_p1  ;;  %p3955_p13 = scmp.ne.s32.totalorder %s337_s13, %s3954_s17 }
  0x19   : > { %p3962_p5 = scmp.lt.s32.totalorder %s337_s13, %s337_s13  ;;  %p3963_p7 = scmp.lt.s32.totalorder %s3954_s17, %s3954_s17 }
  0x1a   : > { %p3945_p12 = pneg %p4287_p11 }
  0x1b   : > { %p3964_p10 = por %p3963_p7, %p3962_p5 }
  0x1c   : > { %p3957_p0 = pnand %p3955_p13, %p3945_p12 }
  0x1e   : > { %p3958_p3 = pneg %p3957_p0 }
  0x20   : > { %p3965_p9 = pnand %p3964_p10, %p3958_p3 }
  0x22   : > { %3968 = shalt.err (!%p3965_p9)
}
  0x23   : > { %s4151_s18 = smov 192   ;;  %s4152_s19 = smov 12  }
  0x24   : > { %s4818_s3 = sld [smem:[#allocation18_spill]]  ;;  %s3980_s30 = scalar_lea.vmem %s372_s16, 4096 }
  0x25   : > { %p3981_p1 = scmp.ne.s32.totalorder %s372_s16, %s3980_s30  ;;  %p3988_p2 = scmp.lt.s32.totalorder %s372_s16, %s372_s16 }
  0x26   : > { %p3989_p6 = scmp.lt.s32.totalorder %s3980_s30, %s3980_s30 }
  0x27   : > { %p3983_p13 = pnand %p3981_p1, %p3945_p12 }
  0x28   : > { %p3990_p5 = por %p3989_p6, %p3988_p2 }
  0x29   : > { %p3984_p0 = pneg %p3983_p13 }
  0x2a   : > { %3668 = dma.hbm_to_vmem [thread:$0]  (!%p4287_p11), %s4818_s3, 3072, %s337_s13, [#allocation6], %s4151_s18, %s4151_s18, %s4152_s19  }
  0x2b   : > { %p3991_p10 = pnand %p3990_p5, %p3984_p0 }
  0x2d   : > { %3994 = shalt.err (!%p3991_p10)
}
  0x2e   : > { %s4153_s15 = smov 256   ;;  %s4154_s17 = smov 16  }
  0x2f   : > { %s4819_s8 = sld [smem:[#allocation20_spill]]  ;;  %s4155_s13 = smov [#allocation7]  }
  0x30   : > { %s349_s18 = sshll.u32 %s4155_s13, 4  ;;  %s350_s18 = int_to_ptr.vmem [resolvable:$true] %s349_s18 }
  0x31   : > { %s4006_s19 = scalar_lea.vmem %s350_s18, 1024  ;;  %p4014_p6 = scmp.lt.s32.totalorder %s350_s18, %s350_s18 }
  0x32   : > { %p4007_p1 = scmp.ne.s32.totalorder %s350_s18, %s4006_s19  ;;  %p4015_p7 = scmp.lt.s32.totalorder %s4006_s19, %s4006_s19 }
  0x34   : > { %p4009_p3 = pnand %p4007_p1, %p3945_p12  ;;  %p4016_p9 = por %p4015_p7, %p4014_p6 }
  0x35   : > { %3674 = dma.hbm_to_vmem [thread:$0]  (!%p4287_p11), %s4819_s8, 4096, %s372_s16, [#allocation9], %s4153_s15, %s4153_s15, %s4154_s17  }
  0x36   : > { %p4010_p2 = pneg %p4009_p3 }
  0x38   : > { %p4017_p13 = pnand %p4016_p9, %p4010_p2 }
  0x3a   : > { %4020 = shalt.err (!%p4017_p13)
}
  0x3b   : > { %s4156_s20 = smov 64   ;;  %s4157_s26 = smov 4  }
  0x3c   : > { %s4820_s4 = sld [smem:[#allocation19_spill]]  ;;  %s4158_s16 = smov [#allocation10]  }
  0x3d   : > { %s387_s30 = sshll.u32 %s4158_s16, 4  ;;  %s388_s30 = int_to_ptr.vmem [resolvable:$true] %s387_s30 }
  0x3e   : > { %s4032_s15 = scalar_lea.vmem %s388_s30, 4096  ;;  %p4040_p1 = scmp.lt.s32.totalorder %s388_s30, %s388_s30 }
  0x3f   : > { %p4033_p0 = scmp.ne.s32.totalorder %s388_s30, %s4032_s15  ;;  %p4041_p3 = scmp.lt.s32.totalorder %s4032_s15, %s4032_s15 }
  0x41   : > { %p4035_p5 = pnand %p4033_p0, %p3945_p12  ;;  %p4042_p2 = por %p4041_p3, %p4040_p1 }
  0x42   : > { %3671 = dma.hbm_to_vmem [thread:$0]  (!%p4287_p11), %s4820_s4, 1024, %s350_s18, [#allocation6], %s4156_s20, %s4156_s20, %s4157_s26  }
  0x43   : > { %p4036_p10 = pneg %p4035_p5 }
  0x45   : > { %p4043_p6 = pnand %p4042_p2, %p4036_p10 }
  0x47   : > { %4046 = shalt.err (!%p4043_p6)
}
  0x48   : > { %s4821_s10 = sld [smem:[#allocation21_spill]]  ;;  %s4326_s18 = sadd.s32 1, %s4147_s24  }
  0x49   : > { %s37_s19 = sadd.s32 1, %s4143_s23  ;;  %s34_s14 = ssub.s32 %s4147_s24, %s4326_s18 }
  0x4a   : > { %p44_p12 = scmp.ne.s32.totalorder %s4143_s23, %s4139_s22  ;;  %p35_p7 = scmp.eq.s32.totalorder %s34_s14, 0 }
  0x4b   : > { %p45_p9 = scmp.eq.s32.totalorder %s4147_s24, 0  ;;  %p4822_p13 = scmp.eq.s32.totalorder %s4259_s25, 1 }
  0x4c   : > { %p3690_p5 = scmp.lt.s32.totalorder %s4147_s24, 2  ;;  %s404_s16 = sand.u32 1, %s4143_s23  }
  0x4d   : > { %p4336_p0 = por %p4822_p13, %p44_p12  ;;  %p46_p10 = por %p45_p9, %p44_p12 }
  0x4e   : > { %3677 = dma.hbm_to_vmem [thread:$0]  (!%p4287_p11), %s4821_s10, 4096, %s388_s30, [#allocation9], %s4156_s20, %s4156_s20, %s4157_s26  }
  0x4f   : > { %s4823_s21 = scalar_select %p4336_p0, 1, 0 }
  0x50   : > { %s4342_s28 = scalar_select %p35_p7, %s4143_s23, %s37_s19  }
  0x51   : > { %s3336_s15 = sshll.u32 %s404_s16, 4  ;;  %s3477_s20 = sshll.u32 %s4147_s24, 8 }
  0x52   : > { %s4349_s17 = scalar_lea.hbm %s4789_s0, %s3477_s20  ;;  %s408_s13 = scalar_lea.vmem [#allocation2], %s3336_s15 }
  0x53   : > { %s415_s14 = sshll.u32 %s408_s13, 4  ;;  %p4353_p11 = pnand %p3690_p5, %p46_p10  ;;  %s4351_s14 = int_to_ptr.vmem [resolvable:$true] %s415_s14 }
  0x54   : > { %s4357_s19 = scalar_lea.sflag [#allocation3], %s404_s16  ;;  %s4047_s4 = scalar_lea.hbm %s4349_s17, 256 }
  0x55   : > { %p4048_p1 = scmp.ne.s32.totalorder %s4349_s17, %s4047_s4  ;;  %p4049_p3 = pneg %p4353_p11 }
  0x56   : > { %s4052_s15 = scalar_lea.hbm %s4789_s0, 512  ;;  %p4053_p12 = scmp.lt.s32.totalorder %s4349_s17, %s4789_s0 }
  0x57   : > { %p4050_p2 = pnand %p4049_p3, %p4048_p1  ;;  %p4054_p7 = scmp.lt.s32.totalorder %s4052_s15, %s4047_s4 }
  0x59   : > { %p4051_p6 = pneg %p4050_p2  ;;  %p4055_p9 = por %p4054_p7, %p4053_p12 }
  0x5b   : > { %p4056_p13 = pnand %p4055_p9, %p4051_p6 }
  0x5d   : > { %4059 = shalt.err (!%p4056_p13)
}
  0x5e   : > { %s4060_s16 = scalar_lea.vmem %s4351_s14, 256  ;;  %s4159_s8 = smov [#allocation2]  }
  0x5f   : > { %p4061_p5 = scmp.ne.s32.totalorder %s4351_s14, %s4060_s16  ;;  %s4065_s10 = sshll.u32 %s4159_s8, 4  ;;  %s4066_s10 = int_to_ptr.vmem [resolvable:$false] %s4065_s10 }
  0x60   : > { %s4067_s20 = scalar_lea.vmem %s4066_s10, 512  ;;  %p4068_p2 = scmp.lt.s32.totalorder %s4351_s14, %s4066_s10 }
  0x61   : > { %p4063_p10 = pnand %p4061_p5, %p4049_p3  ;;  %p4069_p0 = scmp.lt.s32.totalorder %s4067_s20, %s4060_s16 }
  0x63   : > { %p4064_p1 = pneg %p4063_p10  ;;  %p4070_p4 = por %p4069_p0, %p4068_p2 }
  0x65   : > { %p4071_p8 = pnand %p4070_p4, %p4064_p1 }
  0x67   : > { %4074 = shalt.err (!%p4071_p8)
}
  0x68   : > { %s4160_s4 = smov 128   ;;  %s4161_s26 = smov 8  }
  0x69   : > { %3681 = dma.hbm_to_vmem [thread:$0]  (!%p4353_p11), %s4349_s17, 256, %s4351_s14, %s4357_s19, %s4160_s4, %s4160_s4, %s4161_s26  }
  0x6a   : > { %p4825_p3 = scmp.ne.s32.totalorder %s4816_s29, 0 }
  0x6b   : > { %s4381_s8 = sand.u32 (!%p4825_p3), 1, %s4139_s22   ;;  %p4826_p4 = scmp.ne.s32.totalorder (!%p4825_p3), %s4813_s27, 0 }
  0x6c   : > { %427 = sbr.rel (%p4825_p3) target bundleno = 2664 (0xa68), region = 68  ;;  %s3340_s10 = sshll.u32 (!%p4825_p3), %s4381_s8, 4 }
  0x6d   : > { %s430_s15 = scalar_lea.sflag (!%p4825_p3), [#allocation3], %s4381_s8  ;;  %s4387_s30 = scalar_lea.vmem (!%p4825_p3), [#allocation2], %s3340_s10 }
  0x71   : > { %4118 = dma.done.wait (%p4826_p4), %s430_s15, 256  }
  0x72   : > { %4120 = vsyncadd (%p4826_p4), %s430_s15, 4294967040  ;;  %p4827_p8 = scmp.eq.s32.totalorder %s4259_s25, 0 }
  0x74   : > { %4122 = dma.done.wait (%p4827_p8), [#allocation6], 4096   ;;  %p4828_p0 = pmov %p4827_p8 }
  0x76   : > { %4124 = vsyncadd (%p4828_p0), [#allocation6], 4294963200  ;;  %p4829_p11 = pmov %p4828_p0 }
  0x77   : > { %p4830_p6 = pmov %p4828_p0 }
  0x78   : > { %4126 = dma.done.wait (%p4829_p11), [#allocation9], 8192  }
  0x79   : > { %4128 = vsyncadd (%p4830_p6), [#allocation9], 4294959104  ;;  %v491_v0 = vld [vmem:[%s4387_s30] sm:$0xff]  ;;  %v492_v1 = vld [vmem:[%s4387_s30 + $0x8] sm:$0xff]  ;;  %v4162_v4 = vmov 0.0   ;;  %v4163_v27 = vmov 0  }
  0x7a   : > { %495 = vadd.xlane.f32.xlu0 %v491_v0  ;;  %v3765_v2 = vld [vmem:[#allocation5 + $0xac] ss:$12 sps:$4 sm:$0xff]   ;;  %v3767_v3 = vld [vmem:[#allocation5 + $0xa8] ss:$12 sps:$4 sm:$0xff]   ;;  %3557 = vmatprep.subr.bf16.mxu1 %v4162_v4  ;;  %v3768_v5 = vld [vmem:[#allocation5 + $0xb0] ss:$12 sps:$4 sm:$0xff]  }
  0x7b   : > { %695 = vmatprep.subr.bf16.mxu0 %v3765_v2  ;;  %3558 = vmatpush3.bf16.msra.mxu1 %v3768_v5  ;;  %v3769_v14 = vld [vmem:[#allocation5 + $0x94] ss:$12 sps:$4 sm:$0xff]   ;;  %v3771_v15 = vld [vmem:[#allocation5 + $0x90] ss:$12 sps:$4 sm:$0xff]   ;;  %v3772_v16 = vld [vmem:[#allocation5 + $0x98] ss:$12 sps:$4 sm:$0xff]   ;;  %v815_v2 = vlaneseq }
  0x7c   : > { %696 = vmatpush1.bf16.msra.mxu0 %v3767_v3  ;;  %3559 = vmatprep.subr.bf16.mxu1 %v4162_v4  ;;  %v3773_v17 = vld [vmem:[#allocation5 + $0x7c] ss:$12 sps:$4 sm:$0xff]   ;;  %v3775_v18 = vld [vmem:[#allocation5 + $0x78] ss:$12 sps:$4 sm:$0xff]   ;;  %v3776_v19 = vld [vmem:[#allocation5 + $0x80] ss:$12 sps:$4 sm:$0xff]  }
  0x7d   : > { %697 = vmatprep.subr.bf16.mxu0 %v3769_v14  ;;  %v3777_v20 = vld [vmem:[#allocation5 + $0x64] ss:$12 sps:$4 sm:$0xff]   ;;  %v3779_v21 = vld [vmem:[#allocation5 + $0x60] ss:$12 sps:$4 sm:$0xff]   ;;  %v3780_v22 = vld [vmem:[#allocation5 + $0x68] ss:$12 sps:$4 sm:$0xff]   ;;  %727 = vmatprep.mubr.bf16.mxu0 %v4163_v27 }
  0x7e   : > { %497 = vadd.xlane.f32.xlu0 %v492_v1  ;;  %v3781_v23 = vld [vmem:[#allocation5 + $0x4c] ss:$12 sps:$4 sm:$0xff]   ;;  %v3783_v24 = vld [vmem:[#allocation5 + $0x48] ss:$12 sps:$4 sm:$0xff]   ;;  %v3784_v25 = vld [vmem:[#allocation5 + $0x50] ss:$12 sps:$4 sm:$0xff]  }
  0x7f   : > { %3560 = vmatpush3.bf16.msra.mxu1 %v3772_v16  ;;  %v3785_v26 = vld [vmem:[#allocation5 + $0x34] ss:$12 sps:$4 sm:$0xff]   ;;  %vm4164_vm0 = vmmov 0   ;;  %v3787_v28 = vld [vmem:[#allocation5 + $0x30] ss:$12 sps:$4 sm:$0xff]   ;;  %s4165_s14 = smov 64  }
  0x80   : > { %698 = vmatpush1.bf16.msra.mxu0 %v3771_v15  ;;  %3561 = vmatprep.subr.bf16.mxu1 %v4162_v4  ;;  %v3788_v29 = vld [vmem:[#allocation5 + $0x38] ss:$12 sps:$4 sm:$0xff]   ;;  %v3789_v30 = vld [vmem:[#allocation5 + $0x1c] ss:$12 sps:$4 sm:$0xff]   ;;  %v3792_v32 = vld [vmem:[#allocation5 + $0x20] ss:$12 sps:$4 sm:$0xff]  }
  0x81   : > { %699 = vmatprep.subr.bf16.mxu0 %v3773_v17  ;;  %3573 = vmatprep.mubr.msk.bf16.mxu1 %vm4164_vm0, %v4162_v4  ;;  %v3791_v31 = vld [vmem:[#allocation5 + $0x18] ss:$12 sps:$4 sm:$0xff]   ;;  %v3795_v34 = vld [vmem:[#allocation5] ss:$12 sps:$4 sm:$0xff]   ;;  %v3796_v35 = vld [vmem:[#allocation5 + $0x8] ss:$12 sps:$4 sm:$0xff]  }
  0x82   : > { %v3793_v33 = vld [vmem:[#allocation5 + $0x4] ss:$12 sps:$4 sm:$0xff]   ;;  %v3346_v44 = vld [vmem:[%s4790_s1] ss:$0 sm:$0xff]  ;;  %s4166_s19 = smov 96   ;;  %s4167_s13 = smov 32  }
  0x83   : > { %3562 = vmatpush3.bf16.msra.mxu1 %v3776_v19  ;;  %v3347_v48 = vld [vmem:[%s4791_s2] ss:$0 sm:$0xff]  ;;  %v4444_v5 = vshrl.u32 %v815_v2, 7  ;;  %vm1593_vm1 = vcmask 261120   ;;  %vm1782_vm2 = vcmask 130048   ;;  %vm2349_vm3 = vcmask 523264  }
  0x84   : > { %700 = vmatpush1.bf16.msra.mxu0 %v3775_v18  ;;  %3563 = vmatprep.subr.bf16.mxu1 %v4162_v4  ;;  %vm2352_vm4 = vcmask 785408   ;;  %p4831_p7 = scmp.ne.s32.totalorder %s4823_s21, 0 }
  0x85   : > { %701 = vmatprep.subr.bf16.mxu0 %v3777_v20 }
  0x87   : > { %3564 = vmatpush3.bf16.msra.mxu1 %v3780_v22 }
  0x88   : > { %702 = vmatpush1.bf16.msra.mxu0 %v3779_v21  ;;  %3565 = vmatprep.subr.bf16.mxu1 %v4162_v4 }
  0x89   : > { %703 = vmatprep.subr.bf16.mxu0 %v3781_v23 }
  0x8b   : > { %3566 = vmatpush3.bf16.msra.mxu1 %v3784_v25 }
  0x8c   : > { %704 = vmatpush1.bf16.msra.mxu0 %v3783_v24  ;;  %3567 = vmatprep.subr.bf16.mxu1 %v4162_v4 }
  0x8d   : > { %705 = vmatprep.subr.bf16.mxu0 %v3785_v26 }
  0x8f   : > { %3568 = vmatpush3.bf16.msra.mxu1 %v3788_v29 }
  0x90   : > { %706 = vmatpush1.bf16.msra.mxu0 %v3787_v28  ;;  %3569 = vmatprep.subr.bf16.mxu1 %v4162_v4 }
  0x91   : > { %707 = vmatprep.subr.bf16.mxu0 %v3789_v30 }
  0x93   : > { %3570 = vmatpush3.bf16.msra.mxu1 %v3792_v32 }
  0x94   : > { %708 = vmatpush1.bf16.msra.mxu0 %v3791_v31  ;;  %3571 = vmatprep.subr.bf16.mxu1 %v4162_v4 }
  0x95   : > { %709 = vmatprep.subr.bf16.mxu0 %v3793_v33 }
  0x97   : > { %3572 = vmatpush3.bf16.msra.mxu1 %v3796_v35 }
  0x98   : > { %710 = vmatpush1.bf16.msra.mxu0 %v3795_v34  ;;  %3577 = vmatprep.subr.bf16.mxu1 %v4162_v4 }
  0x99   : > { %3601 = vmatprep.subr.bf16.mxu0 %v4162_v4 }
 0x103   : > { %v496_v6 = vpop.xlane.xlu0 %495 }
 0x104   : > { %v500_v7 = vmul.f32 0.0078125, %v496_v6  ;;  %v4169_v6 = vmov 1934713408  }
 0x106   : > { %v4405_v8 = vsub.f32 %v491_v0, %v500_v7  ;;  %v4168_v0 = vmov 1983009808   ;;  %v844_v7 = vunpack.c.l.s4 %v4169_v6 }
 0x107   : > { %v498_v9 = vpop.xlane.xlu0 %497 }
 0x108   : > { %v501_v10 = vmul.f32 0.0078125, %v498_v9  ;;  %v504_v11 = vmul.f32 %v4405_v8, %v4405_v8  ;;  %v845_v16 = vunpack.c.0.s8 %v844_v7 }
 0x10a   : > { %v4409_v12 = vsub.f32 %v492_v1, %v501_v10  ;;  %506 = vadd.xlane.f32.xlu1 %v504_v11  ;;  %v813_v1 = vunpack.c.l.s4 %v4168_v0  ;;  %v4457_v24 = vsub.s32 %v845_v16, %v4444_v5 }
 0x10c   : > { %v505_v13 = vmul.f32 %v4409_v12, %v4409_v12  ;;  %v814_v3 = vunpack.c.0.s8 %v813_v1 }
 0x10e   : > { %508 = vadd.xlane.f32.xlu1 %v505_v13  ;;  %v4451_v14 = vsub.s32 %v814_v3, %v4444_v5 }
 0x193   : > { %v507_v36 = vpop.xlane.xlu1 %506 }
 0x194   : > { %v510_v37 = vmul.f32 0.0078125, %v507_v36 }
 0x196   : > { %v512_v38 = vadd.f32 1e-05, %v510_v37 }
 0x197   : > { %v509_v39 = vpop.xlane.xlu1 %508 }
 0x198   : > { %3885 = vrsqrt.f32 %v512_v38  ;;  %v511_v40 = vmul.f32 0.0078125, %v509_v39 }
 0x19a   : > { %v513_v41 = vadd.f32 1e-05, %v511_v40 }
 0x19c   : > { %3887 = vrsqrt.f32 %v513_v41 }
 0x1a5   : > { %v3886_v42 = vpop.eup %3885 }
 0x1a6   : > { %v516_v43 = vmul.f32 %v3886_v42, %v4405_v8  ;;  %v4448_v8 = vpack.i.b16 %v4163_v27, %v4163_v27 }
 0x1a8   : > { %v524_v47 = vmul.f32 %v3346_v44, %v516_v43 }
 0x1a9   : > { %v3888_v45 = vpop.eup %3887 }
 0x1aa   : > { %v517_v46 = vmul.f32 %v3888_v45, %v4409_v12  ;;  %v532_v50 = vadd.f32 %v3347_v48, %v524_v47 }
 0x1ac   : > { %v525_v49 = vmul.f32 %v3346_v44, %v517_v46 }
 0x1ae   : > { %v533_v51 = vadd.f32 %v3347_v48, %v525_v49 }
 0x1b0   : > { %v534_v52 = vpack.c.bf16 %v533_v51, %v532_v50 }
 0x1b2   : > { %728 = vmatmul.mubr.bf16.vlgmr.msra.gmra.mxu0 %v534_v52  ;;  %3574 = vmatmul.mubr.bf16.vlgmr.msra.gmra.mxu1 %v534_v52 }
 0x1b3   : > { %3579 = vmatprep.mubr.msk.bf16.mxu1 %vm4164_vm0, %v4162_v4  ;;  %3603 = vmatprep.mubr.msk.bf16.mxu0 %vm4164_vm0, %v4162_v4 }
 0x272   : > { %v729_v53 = vpop.f32.mrf.mxu0  ;;  %v772_v54 = vpop.f32.mrf.mxu1 }
 0x274   : > { %v731_v55 = vpop.f32.mrf.mxu0  ;;  %v3575_v56 = vpop.f32.mrf.mxu1 }
 0x276   : > { %v733_v57 = vpop.f32.mrf.mxu0  ;;  %v775_v58 = vpop.f32.mrf.mxu1 }
 0x277   : > { %v4436_v59 = vpack.c.bf16 %v775_v58, %v772_v54  ;;  %v779_v63 = vpack.c.bf16 %v733_v57, %v729_v53 }
 0x278   : > { %v735_v60 = vpop.f32.mrf.mxu0  ;;  %v3576_v61 = vpop.f32.mrf.mxu1 }
 0x279   : > { %v780_v62 = vpack.c.bf16 %v735_v60, %v731_v55  ;;  %v793_v31 = vshrl.u32 %v779_v63, 16 }
 0x27b   : > { %1058 = vrot.lane.b32.xlu1 %v780_v62, %s4165_s14  ;;  %1056 = vrot.lane.b32.xlu0 %v780_v62, %s4166_s19  ;;  %v1066_v12 = vshrl.u32 %v780_v62, 16 }
 0x27f   : > { %1060 = vrot.lane.b32.xlu1 %v780_v62, %s4167_s13  ;;  %785 = vrot.lane.b32.xlu0 %v779_v63, %s4165_s14 }
 0x283   : > { %783 = vrot.lane.b32.xlu1 %v779_v63, %s4166_s19 }
 0x287   : > { %787 = vrot.lane.b32.xlu1 %v779_v63, %s4167_s13 }
 0x2ed   : > { %v1059_v9 = vpop.permute.xlu1 %1058  ;;  %v1057_v10 = vpop.permute.xlu0 %1056 }
 0x2ee   : > { %v1064_v11 = vpack.i.b16 %v1057_v10, %v780_v62  ;;  %v1067_v13 = vshrl.u32 %v1057_v10, 16  ;;  %v1074_v21 = vshrl.u32 %v1059_v9, 16 }
 0x2f0   : > { %v1068_v15 = vpack.i.b16 %v1067_v13, %v1066_v12  ;;  %v1078_v17 = vcombine.high %v1064_v11, %v4448_v8  ;;  %v1085_v23 = vrot.slane %v1064_v11, %v4451_v14 }
 0x2f1   : > { %v1061_v18 = vpop.permute.xlu1 %1060  ;;  %v786_v53 = vpop.permute.xlu0 %785 }
 0x2f2   : > { %v1144_v19 = vcombine.high %v1068_v15, %v4448_v8  ;;  %v1072_v20 = vpack.i.b16 %v1061_v18, %v1059_v9  ;;  %v1075_v22 = vshrl.u32 %v1061_v18, 16  ;;  %v1092_v28 = vrot.slane %v1078_v17, %v4451_v14 }
 0x2f3   : > { %v1151_v29 = vrot.slane %v1068_v15, %v4451_v14 }
 0x2f4   : > { %v1093_v25 = vcombine.high %v1072_v20, %v4448_v8  ;;  %v1100_v26 = vrot.slane %v1072_v20, %v4451_v14  ;;  %v1076_v30 = vpack.i.b16 %v1075_v22, %v1074_v21  ;;  %v1158_v33 = vrot.slane %v1144_v19, %v4451_v14 }
 0x2f5   : > { %v784_v32 = vpop.permute.xlu1 %783 }
 0x2f6   : > { %v1107_v34 = vrot.slane %v1093_v25, %v4451_v14  ;;  %v1108_v35 = vcombine.low %v1085_v23, %v1100_v26  ;;  %v1109_v36 = vcombine.high %v1085_v23, %v1100_v26  ;;  %v1159_v37 = vcombine.high %v1076_v30, %v4448_v8 }
 0x2f7   : > { %v1166_v38 = vrot.slane %v1076_v30, %v4451_v14  ;;  %v791_v39 = vpack.i.b16 %v784_v32, %v779_v63  ;;  %v794_v40 = vshrl.u32 %v784_v32, 16  ;;  %v801_v63 = vshrl.u32 %v786_v53, 16 }
 0x2f8   : > { %v1116_v41 = vrot.slane %v1108_v35, %v4457_v24  ;;  %v1123_v42 = vrot.slane %v1109_v36, %v4457_v24  ;;  %v1124_v43 = vcombine.low %v1092_v28, %v1107_v34  ;;  %v1125_v44 = vcombine.high %v1092_v28, %v1107_v34 }
 0x2f9   : > { %v1173_v45 = vrot.slane %v1159_v37, %v4451_v14  ;;  %v1174_v46 = vcombine.low %v1151_v29, %v1166_v38  ;;  %v1175_v47 = vcombine.high %v1151_v29, %v1166_v38  ;;  %v795_v48 = vpack.i.b16 %v794_v40, %v793_v31  ;;  %v788_v61 = vpop.permute.xlu1 %787 }
 0x2fa   : > { %v1132_v49 = vrot.slane %v1124_v43, %v4457_v24  ;;  %v1139_v50 = vrot.slane %v1125_v44, %v4457_v24  ;;  %v1210_v51 = vcombine.low %v1116_v41, %v1123_v42  ;;  %v3376_v52 = vcombine.high %v1116_v41, %v1123_v42 }
 0x2fb   : > { %v1182_v54 = vrot.slane %v1174_v46, %v4457_v24  ;;  %v1189_v55 = vrot.slane %v1175_v47, %v4457_v24  ;;  %v1190_v56 = vcombine.low %v1158_v33, %v1173_v45  ;;  %v1191_v57 = vcombine.high %v1158_v33, %v1173_v45 }
 0x2fc   : > { %v1226_v58 = vcombine.low %v1132_v49, %v1139_v50  ;;  %v3377_v60 = vcombine.high %v1132_v49, %v1139_v50  ;;  %v4475_v62 = vrot.slane %v1210_v51, %v4451_v14  ;;  %v811_v2 = vcombine.high %v791_v39, %v4448_v8 }
 0x2fd   : > { %v1198_v0 = vrot.slane %v1190_v56, %v4457_v24  ;;  %v1205_v1 = vrot.slane %v1191_v57, %v4457_v24  ;;  %v877_v3 = vcombine.high %v795_v48, %v4448_v8  ;;  %v1225_v6 = vrot.slane %v3376_v52, %v4451_v14 }
 0x2fe   : > { %v1260_v7 = vcombine.low %v1182_v54, %v1189_v55  ;;  %v799_v9 = vpack.i.b16 %v788_v61, %v786_v53  ;;  %v802_v10 = vshrl.u32 %v788_v61, 16  ;;  %v3378_v11 = vcombine.high %v1182_v54, %v1189_v55 }
 0x2ff   : > { %v818_v12 = vrot.slane %v791_v39, %v4451_v14  ;;  %v1233_v13 = vrot.slane %v1226_v58, %v4451_v14  ;;  %v1241_v15 = vrot.slane %v3377_v60, %v4451_v14  ;;  %v884_v16 = vrot.slane %v795_v48, %v4451_v14 }
 0x300   : > { %v803_v17 = vpack.i.b16 %v802_v10, %v801_v63  ;;  %v826_v18 = vcombine.high %v799_v9, %v4448_v8  ;;  %v833_v19 = vrot.slane %v799_v9, %v4451_v14  ;;  %v1276_v20 = vcombine.low %v1198_v0, %v1205_v1 }
 0x301   : > { %v3379_v21 = vcombine.high %v1198_v0, %v1205_v1  ;;  %v825_v22 = vrot.slane %v811_v2, %v4451_v14  ;;  %v891_v23 = vrot.slane %v877_v3, %v4451_v14  ;;  %v1242_v31 = vcombine.low %v4475_v62, %v1225_v6 }
 0x302   : > { %v840_v25 = vrot.slane %v826_v18, %v4451_v14  ;;  %v841_v26 = vcombine.low %v818_v12, %v833_v19  ;;  %v842_v28 = vcombine.high %v818_v12, %v833_v19  ;;  %v892_v29 = vcombine.high %v803_v17, %v4448_v8 }
 0x303   : > { %v899_v30 = vrot.slane %v803_v17, %v4451_v14  ;;  %v1250_v32 = vcombine.low %v1233_v13, %v1241_v15  ;;  %v1267_v33 = vrot.slane %v1260_v7, %v4451_v14  ;;  %v1275_v41 = vrot.slane %v3378_v11, %v4451_v14 }
 0x304   : > { %v849_v34 = vrot.slane %v841_v26, %v4457_v24  ;;  %v856_v35 = vrot.slane %v842_v28, %v4457_v24  ;;  %v857_v36 = vcombine.low %v825_v22, %v840_v25  ;;  %v858_v37 = vcombine.high %v825_v22, %v840_v25 }
 0x305   : > { %v906_v38 = vrot.slane %v892_v29, %v4451_v14  ;;  %v907_v39 = vcombine.low %v884_v16, %v899_v30  ;;  %v908_v40 = vcombine.high %v884_v16, %v899_v30  ;;  %v1283_v44 = vrot.slane %v1276_v20, %v4451_v14 }
 0x306   : > { %v865_v42 = vrot.slane %v857_v36, %v4457_v24  ;;  %v872_v43 = vrot.slane %v858_v37, %v4457_v24  ;;  %v1291_v45 = vrot.slane %v3379_v21, %v4451_v14  ;;  %v943_v50 = vcombine.low %v849_v34, %v856_v35 }
 0x307   : > { %v915_v46 = vrot.slane %v907_v39, %v4457_v24  ;;  %v922_v47 = vrot.slane %v908_v40, %v4457_v24  ;;  %v923_v48 = vcombine.low %v891_v23, %v906_v38  ;;  %v924_v49 = vcombine.high %v891_v23, %v906_v38 }
 0x308   : > { %v3372_v51 = vcombine.high %v849_v34, %v856_v35  ;;  %v959_v52 = vcombine.low %v865_v42, %v872_v43  ;;  %v3373_v53 = vcombine.high %v865_v42, %v872_v43  ;;  %v1292_v61 = vcombine.low %v1267_v33, %v1275_v41 }
 0x309   : > { %v931_v54 = vrot.slane %v923_v48, %v4457_v24  ;;  %v938_v55 = vrot.slane %v924_v49, %v4457_v24  ;;  %v993_v56 = vcombine.low %v915_v46, %v922_v47  ;;  %v3374_v57 = vcombine.high %v915_v46, %v922_v47 }
 0x30a   : > { %v966_v58 = vrot.slane %v959_v52, %v4451_v14  ;;  %v974_v60 = vrot.slane %v3373_v53, %v4451_v14  ;;  %v950_v2 = vrot.slane %v943_v50, %v4451_v14  ;;  %v958_v3 = vrot.slane %v3372_v51, %v4451_v14 }
 0x30b   : > { %v1000_v62 = vrot.slane %v993_v56, %v4451_v14  ;;  %v1008_v63 = vrot.slane %v3374_v57, %v4451_v14  ;;  %v1009_v0 = vcombine.low %v931_v54, %v938_v55  ;;  %v3375_v1 = vcombine.high %v931_v54, %v938_v55 }
 0x30c   : > { %v1257_v6 = vrot.slane %v1250_v32, %v4457_v24  ;;  %v1300_v7 = vcombine.low %v1283_v44, %v1291_v45  ;;  %v1249_v11 = vrot.slane %v1242_v31, %v4457_v24  ;;  %v983_v12 = vcombine.low %v966_v58, %v974_v60 }
 0x30d   : > { %v1016_v9 = vrot.slane %v1009_v0, %v4451_v14  ;;  %v1024_v10 = vrot.slane %v3375_v1, %v4451_v14  ;;  %v1025_v13 = vcombine.low %v1000_v62, %v1008_v63  ;;  %v1299_v15 = vrot.slane %v1292_v61, %v4457_v24 }
 0x30e   : > { %v1307_v16 = vrot.slane %v1300_v7, %v4457_v24  ;;  %v975_v18 = vcombine.low %v950_v2, %v958_v3  ;;  %v1258_v19 = vcombine.low %v1249_v11, %v1257_v6  ;;  %v990_v23 = vrot.slane %v983_v12, %v4457_v24 }
 0x30f   : > { %v1033_v17 = vcombine.low %v1016_v9, %v1024_v10  ;;  %v1032_v25 = vrot.slane %v1025_v13, %v4457_v24  ;;  %v1259_v38 = vcombine.high %v1249_v11, %v1257_v6 }
 0x310   : > { %v1308_v20 = vcombine.low %v1299_v15, %v1307_v16  ;;  %v982_v26 = vrot.slane %v975_v18, %v4457_v24  ;;  %v1313_v32 = vshrl.u32 %v1258_v19, 16  ;;  %v1309_v36 = vcombine.high %v1299_v15, %v1307_v16 }
 0x311   : > { %v1040_v21 = vrot.slane %v1033_v17, %v4457_v24  ;;  %v1319_v45 = vshrl.u32 %v1259_v38, 16 }
 0x312   : > { %v1312_v22 = vpack.i.b16 %v1308_v20, %v1258_v19  ;;  %v1314_v30 = vshrl.u32 %v1308_v20, 16  ;;  %v991_v31 = vcombine.low %v982_v26, %v990_v23  ;;  %v1318_v40 = vpack.i.b16 %v1309_v36, %v1259_v38 }
 0x313   : > { %v1041_v29 = vcombine.low %v1032_v25, %v1040_v21  ;;  %v1320_v43 = vshrl.u32 %v1309_v36, 16  ;;  %v1042_v44 = vcombine.high %v1032_v25, %v1040_v21  ;;  %v992_v46 = vcombine.high %v982_v26, %v990_v23 }
 0x314   : > { %v1598_v28 = vsel %vm1593_vm1, %v1312_v22, 0  ;;  %v1315_v34 = vpack.i.b16 %v1314_v30, %v1313_v32  ;;  %v1046_v39 = vshrl.u32 %v991_v31, 16  ;;  %v1692_v42 = vsel %vm1593_vm1, %v1318_v40, 0 }
 0x315   : > { %3578 = vmatpush3.bf16.xpose.msra.mxu1 %v1598_v28  ;;  %v1045_v33 = vpack.i.b16 %v1041_v29, %v991_v31  ;;  %v1047_v37 = vshrl.u32 %v1041_v29, 16  ;;  %v1321_v47 = vpack.i.b16 %v1320_v43, %v1319_v45  ;;  %v1051_v48 = vpack.i.b16 %v1042_v44, %v992_v46 }
 0x316   : > { %3583 = vmatprep.subr.bf16.mxu1 %v4162_v4  ;;  %v1645_v35 = vsel %vm1593_vm1, %v1315_v34, 0  ;;  %v1053_v50 = vshrl.u32 %v1042_v44, 16  ;;  %v1052_v51 = vshrl.u32 %v992_v46, 16 }
 0x317   : > { %v1048_v41 = vpack.i.b16 %v1047_v37, %v1046_v39  ;;  %v1739_v49 = vsel %vm1593_vm1, %v1321_v47, 0 }
 0x318   : > { %v1054_v52 = vpack.i.b16 %v1053_v50, %v1052_v51 }
 0x31c   : > { %3580 = vmatmul.mubr.msk.bf16.vlgmr.msra.gmra.mxu1 %vm1593_vm1, %v1045_v33 }
 0x31d   : > { %3584 = vmatpush3.bf16.xpose.msra.mxu1 %v1645_v35  ;;  %3585 = vmatprep.mubr.msk.bf16.mxu1 %vm4164_vm0, %v4162_v4 }
 0x31e   : > { %3589 = vmatprep.subr.bf16.mxu1 %v4162_v4 }
 0x324   : > { %3586 = vmatmul.mubr.msk.bf16.vlgmr.msra.gmra.mxu1 %vm1593_vm1, %v1048_v41 }
 0x325   : > { %3590 = vmatpush3.bf16.xpose.msra.mxu1 %v1692_v42  ;;  %3591 = vmatprep.mubr.msk.bf16.mxu1 %vm4164_vm0, %v4162_v4 }
 0x326   : > { %3595 = vmatprep.subr.bf16.mxu1 %v4162_v4 }
 0x32c   : > { %3592 = vmatmul.mubr.msk.bf16.vlgmr.msra.gmra.mxu1 %vm1593_vm1, %v1051_v48 }
 0x32d   : > { %3596 = vmatpush3.bf16.xpose.msra.mxu1 %v1739_v49  ;;  %3597 = vmatprep.mubr.msk.bf16.mxu1 %vm4164_vm0, %v4162_v4 }
 0x32e   : > { %3607 = vmatprep.subr.bf16.mxu1 %v4162_v4 }
 0x334   : > { %3598 = vmatmul.mubr.msk.bf16.vlgmr.msra.gmra.mxu1 %vm1593_vm1, %v1054_v52 }
 0x335   : > { %3609 = vmatprep.mubr.msk.bf16.mxu1 %vm4164_vm0, %v4162_v4 }
 0x3dc   : > { %v1634_v53 = vpop.f32.mrf.mxu1 }
 0x3dd   : > { %v1783_v54 = vsel %vm1782_vm2, %v1634_v53, -inf }
 0x3de   : > { %1784 = vmax.xlane.f32.xlu0 %v1783_v54  ;;  %v3581_v55 = vpop.f32.mrf.mxu1 }
 0x3e0   : > { %v1637_v56 = vpop.f32.mrf.mxu1 }
 0x3e1   : > { %v1786_v57 = vsel %vm1782_vm2, %v1637_v56, -inf }
 0x3e2   : > { %1787 = vmax.xlane.f32.xlu1 %v1786_v57  ;;  %v3582_v58 = vpop.f32.mrf.mxu1 }
 0x3e4   : > { %v1681_v60 = vpop.f32.mrf.mxu1 }
 0x3e5   : > { %v1789_v61 = vsel %vm1782_vm2, %v1681_v60, -inf }
 0x3e6   : > { %1790 = vmax.xlane.f32.xlu0 %v1789_v61  ;;  %v3587_v62 = vpop.f32.mrf.mxu1 }
 0x3e8   : > { %v1684_v63 = vpop.f32.mrf.mxu1 }
 0x3e9   : > { %v1792_v0 = vsel %vm1782_vm2, %v1684_v63, -inf }
 0x3ea   : > { %1793 = vmax.xlane.f32.xlu0 %v1792_v0  ;;  %v3588_v1 = vpop.f32.mrf.mxu1 }
 0x3ec   : > { %v4547_v2 = vpop.f32.mrf.mxu1 }
 0x3ed   : > { %v1795_v3 = vsel %vm1782_vm2, %v4547_v2, -inf }
 0x3ee   : > { %1796 = vmax.xlane.f32.xlu0 %v1795_v3  ;;  %v3593_v6 = vpop.f32.mrf.mxu1  ;;  %v1333_v3 = vshrl.u32 %v4436_v59, 16 }
 0x3f0   : > { %v1731_v7 = vpop.f32.mrf.mxu1 }
 0x3f1   : > { %v1798_v9 = vsel %vm1782_vm2, %v1731_v7, -inf }
 0x3f2   : > { %1799 = vmax.xlane.f32.xlu1 %v1798_v9  ;;  %v3594_v10 = vpop.f32.mrf.mxu1 }
 0x3f4   : > { %v1775_v11 = vpop.f32.mrf.mxu1 }
 0x3f5   : > { %v1801_v12 = vsel %vm1782_vm2, %v1775_v11, -inf }
 0x3f6   : > { %1802 = vmax.xlane.f32.xlu0 %v1801_v12  ;;  %v3599_v13 = vpop.f32.mrf.mxu1 }
 0x3f8   : > { %v1778_v15 = vpop.f32.mrf.mxu1 }
 0x3f9   : > { %v1804_v16 = vsel %vm1782_vm2, %v1778_v15, -inf }
 0x3fa   : > { %1805 = vmax.xlane.f32.xlu1 %v1804_v16  ;;  %v3600_v17 = vpop.f32.mrf.mxu1 }
 0x40b   : > { %1325 = vrot.lane.b32.xlu1 %v4436_v59, %s4165_s14 }
 0x40c   : > { %1323 = vrot.lane.b32.xlu0 %v4436_v59, %s4166_s19 }
 0x467   : > { %v1785_v18 = vpop.xlane.xlu0 %1784 }
 0x468   : > { %v1807_v19 = vsub.f32 %v1634_v53, %v1785_v18 }
 0x46a   : > { %v1815_v20 = vmul.f32 1.442695, %v1807_v19 }
 0x46b   : > { %v1788_v21 = vpop.xlane.xlu1 %1787 }
 0x46c   : > { %3889 = vpow2.f32 %v1815_v20  ;;  %v1808_v22 = vsub.f32 %v1637_v56, %v1788_v21 }
 0x46e   : > { %v1817_v23 = vmul.f32 1.442695, %v1808_v22 }
 0x46f   : > { %v1791_v25 = vpop.xlane.xlu0 %1790 }
 0x470   : > { %3891 = vpow2.f32 %v1817_v23  ;;  %v1809_v26 = vsub.f32 %v1681_v60, %v1791_v25 }
 0x472   : > { %v1819_v28 = vmul.f32 1.442695, %v1809_v26 }
 0x473   : > { %v1794_v29 = vpop.xlane.xlu0 %1793 }
 0x474   : > { %3893 = vpow2.f32 %v1819_v28  ;;  %v1810_v30 = vsub.f32 %v1684_v63, %v1794_v29 }
 0x476   : > { %v1821_v31 = vmul.f32 1.442695, %v1810_v30 }
 0x477   : > { %v1797_v34 = vpop.xlane.xlu0 %1796 }
 0x478   : > { %3895 = vpow2.f32 %v1821_v31  ;;  %v1811_v56 = vsub.f32 %v4547_v2, %v1797_v34 }
 0x479   : > { %v4558_v32 = vpop.eup %3889 }
 0x47a   : > { %v1831_v33 = vsel %vm1782_vm2, %v4558_v32, 0.0  ;;  %v1823_v57 = vmul.f32 1.442695, %v1811_v56 }
 0x47b   : > { %v1800_v35 = vpop.xlane.xlu1 %1799  ;;  %1832 = vadd.xlane.f32.xlu0 %v1831_v33 }
 0x47c   : > { %v1812_v36 = vsub.f32 %v1731_v7, %v1800_v35 }
 0x47d   : > { %v4562_v37 = vpop.eup %3891 }
 0x47e   : > { %v1825_v38 = vmul.f32 1.442695, %v1812_v36  ;;  %v1834_v39 = vsel %vm1782_vm2, %v4562_v37, 0.0 }
 0x47f   : > { %v1803_v40 = vpop.xlane.xlu0 %1802  ;;  %1835 = vadd.xlane.f32.xlu1 %v1834_v39 }
 0x480   : > { %3897 = vpow2.f32 %v1825_v38  ;;  %v1813_v41 = vsub.f32 %v1775_v11, %v1803_v40 }
 0x481   : > { %v4566_v42 = vpop.eup %3893 }
 0x482   : > { %v1827_v43 = vmul.f32 1.442695, %v1813_v41  ;;  %v1837_v44 = vsel %vm1782_vm2, %v4566_v42, 0.0 }
 0x483   : > { %1838 = vadd.xlane.f32.xlu0 %v1837_v44  ;;  %v1806_v45 = vpop.xlane.xlu1 %1805  ;;  %v1324_v62 = vpop.permute.xlu0 %1323 }
 0x484   : > { %3899 = vpow2.f32 %v1827_v43  ;;  %v1814_v46 = vsub.f32 %v1778_v15, %v1806_v45  ;;  %v1334_v0 = vshrl.u32 %v1324_v62, 16  ;;  %v1331_v6 = vpack.i.b16 %v1324_v62, %v4436_v59 }
 0x485   : > { %v4570_v47 = vpop.eup %3895 }
 0x486   : > { %v1829_v48 = vmul.f32 1.442695, %v1814_v46  ;;  %v1840_v49 = vsel %vm1782_vm2, %v4570_v47, 0.0  ;;  %v1335_v9 = vpack.i.b16 %v1334_v0, %v1333_v3  ;;  %v1345_v10 = vcombine.high %v1331_v6, %v4448_v8 }
 0x487   : > { %1841 = vadd.xlane.f32.xlu1 %v1840_v49  ;;  %v1326_v61 = vpop.permute.xlu1 %1325  ;;  %v1352_v16 = vrot.slane %v1331_v6, %v4451_v14 }
 0x488   : > { %3901 = vpow2.f32 %v1829_v48  ;;  %v1341_v12 = vshrl.u32 %v1326_v61, 16  ;;  %v1411_v17 = vcombine.high %v1335_v9, %v4448_v8  ;;  %v1359_v21 = vrot.slane %v1345_v10, %v4451_v14 }
 0x489   : > { %3903 = vpow2.f32 %v1823_v57  ;;  %v1418_v28 = vrot.slane %v1335_v9, %v4451_v14 }
 0x48a   : > { %v1425_v29 = vrot.slane %v1411_v17, %v4451_v14 }
 0x48d   : > { %v4574_v50 = vpop.eup %3897 }
 0x48e   : > { %v1846_v51 = vsel %vm1782_vm2, %v4574_v50, 0.0 }
 0x48f   : > { %1847 = vadd.xlane.f32.xlu0 %v1846_v51 }
 0x491   : > { %v4578_v52 = vpop.eup %3899 }
 0x492   : > { %v1849_v53 = vsel %vm1782_vm2, %v4578_v52, 0.0 }
 0x493   : > { %1850 = vadd.xlane.f32.xlu0 %v1849_v53 }
 0x495   : > { %v4582_v54 = vpop.eup %3901 }
 0x496   : > { %v1852_v55 = vsel %vm1782_vm2, %v4582_v54, 0.0  ;;  %v4589_v58 = vpop.eup %3903 }
 0x497   : > { %1853 = vadd.xlane.f32.xlu0 %v1852_v55  ;;  %v1843_v60 = vsel %vm1782_vm2, %v4589_v58, 0.0 }
 0x498   : > { %1327 = vrot.lane.b32.xlu1 %v4436_v59, %s4167_s13 }
 0x4bc   : > { %1844 = vadd.xlane.f32.xlu1 %v1843_v60 }
 0x504   : > { %v1833_v1 = vpop.xlane.xlu0 %1832 }
 0x505   : > { %3905 = vrcp.f32 %v1833_v1 }
 0x508   : > { %v1836_v63 = vpop.xlane.xlu1 %1835 }
 0x509   : > { %3907 = vrcp.f32 %v1836_v63 }
 0x50c   : > { %v1839_v2 = vpop.xlane.xlu0 %1838 }
 0x50d   : > { %3909 = vrcp.f32 %v1839_v2 }
 0x510   : > { %v1842_v7 = vpop.xlane.xlu1 %1841 }
 0x511   : > { %3911 = vrcp.f32 %v1842_v7 }
 0x514   : > { %v1328_v11 = vpop.permute.xlu1 %1327 }
 0x515   : > { %v1339_v13 = vpack.i.b16 %v1328_v11, %v1326_v61  ;;  %v1342_v15 = vshrl.u32 %v1328_v11, 16  ;;  %v3906_v11 = vpop.eup %3905 }
 0x517   : > { %v1343_v18 = vpack.i.b16 %v1342_v15, %v1341_v12  ;;  %v1360_v19 = vcombine.high %v1339_v13, %v4448_v8  ;;  %v1367_v20 = vrot.slane %v1339_v13, %v4451_v14 }
 0x518   : > { %v4600_v59 = vpop.xlane.xlu0 %1847 }
 0x519   : > { %v1374_v22 = vrot.slane %v1360_v19, %v4451_v14  ;;  %v1375_v23 = vcombine.low %v1352_v16, %v1367_v20  ;;  %v1376_v25 = vcombine.high %v1352_v16, %v1367_v20  ;;  %v1426_v26 = vcombine.high %v1343_v18, %v4448_v8  ;;  %v3908_v16 = vpop.eup %3907 }
 0x51a   : > { %v1433_v30 = vrot.slane %v1343_v18, %v4451_v14  ;;  %v3910_v20 = vpop.eup %3909 }
 0x51b   : > { %v1383_v31 = vrot.slane %v1375_v23, %v4457_v24  ;;  %v1390_v33 = vrot.slane %v1376_v25, %v4457_v24  ;;  %v1391_v34 = vcombine.low %v1359_v21, %v1374_v22  ;;  %v1392_v35 = vcombine.high %v1359_v21, %v1374_v22 }
 0x51c   : > { %v1440_v36 = vrot.slane %v1426_v26, %v4451_v14  ;;  %v1441_v38 = vcombine.low %v1418_v28, %v1433_v30  ;;  %v1442_v39 = vcombine.high %v1418_v28, %v1433_v30  ;;  %v1851_v40 = vpop.xlane.xlu0 %1850 }
 0x51d   : > { %v1399_v8 = vrot.slane %v1391_v34, %v4457_v24  ;;  %v1406_v41 = vrot.slane %v1392_v35, %v4457_v24  ;;  %v1477_v43 = vcombine.low %v1383_v31, %v1390_v33  ;;  %v3380_v44 = vcombine.high %v1383_v31, %v1390_v33 }
 0x51e   : > { %v1449_v45 = vrot.slane %v1441_v38, %v4457_v24  ;;  %v1456_v46 = vrot.slane %v1442_v39, %v4457_v24  ;;  %v1457_v48 = vcombine.low %v1425_v29, %v1440_v36  ;;  %v1458_v49 = vcombine.high %v1425_v29, %v1440_v36  ;;  %v3912_v25 = vpop.eup %3911 }
 0x51f   : > { %v1484_v51 = vrot.slane %v1477_v43, %v4451_v14  ;;  %v1492_v53 = vrot.slane %v3380_v44, %v4451_v14  ;;  %v1493_v55 = vcombine.low %v1399_v8, %v1406_v41  ;;  %v3381_v56 = vcombine.high %v1399_v8, %v1406_v41 }
 0x520   : > { %v1465_v57 = vrot.slane %v1457_v48, %v4457_v24  ;;  %v1472_v60 = vrot.slane %v1458_v49, %v4457_v24  ;;  %v1527_v61 = vcombine.low %v1449_v45, %v1456_v46  ;;  %v3382_v62 = vcombine.high %v1449_v45, %v1456_v46  ;;  %v1854_v2 = vpop.xlane.xlu0 %1853 }
 0x521   : > { %v1500_v63 = vrot.slane %v1493_v55, %v4451_v14  ;;  %v1508_v0 = vrot.slane %v3381_v56, %v4451_v14  ;;  %v1509_v1 = vcombine.low %v1484_v51, %v1492_v53  ;;  %3913 = vrcp.f32 %v1854_v2 }
 0x522   : > { %v1534_v3 = vrot.slane %v1527_v61, %v4451_v14  ;;  %v1542_v6 = vrot.slane %v3382_v62, %v4451_v14  ;;  %v1543_v7 = vcombine.low %v1465_v57, %v1472_v60  ;;  %v3383_v9 = vcombine.high %v1465_v57, %v1472_v60  ;;  %v3800_v57 = vld [vmem:[#allocation7 + $0x20] sm:$0xff]  }
 0x523   : > { %v1517_v10 = vcombine.low %v1500_v63, %v1508_v0  ;;  %v1516_v18 = vrot.slane %v1509_v1, %v4457_v24  ;;  %3915 = vrcp.f32 %v1851_v40  ;;  %v1864_v29 = vmul.f32 %v3908_v16, %v4562_v37 }
 0x524   : > { %v1550_v12 = vrot.slane %v1543_v7, %v4451_v14  ;;  %v1558_v13 = vrot.slane %v3383_v9, %v4451_v14  ;;  %v1559_v15 = vcombine.low %v1534_v3, %v1542_v6  ;;  %v1863_v35 = vmul.f32 %v3906_v11, %v4558_v32 }
 0x525   : > { %v1524_v17 = vrot.slane %v1517_v10, %v4457_v24  ;;  %v1866_v36 = vmul.f32 %v3912_v25, %v4570_v47  ;;  %v1865_v8 = vmul.f32 %v3910_v20, %v4566_v42  ;;  %3917 = vrcp.f32 %v4600_v59  ;;  %v3799_v59 = vld [vmem:[#allocation7 + $0x28] sm:$0xff]  }
 0x526   : > { %v1567_v19 = vcombine.low %v1550_v12, %v1558_v13  ;;  %v1566_v22 = vrot.slane %v1559_v15, %v4457_v24  ;;  %v1871_v40 = vpack.c.bf16 %v1864_v29, %v1863_v35 }
 0x527   : > { %v1525_v21 = vcombine.low %v1516_v18, %v1524_v17  ;;  %v1526_v34 = vcombine.high %v1516_v18, %v1524_v17  ;;  %v1872_v37 = vpack.c.bf16 %v1866_v36, %v1865_v8 }
 0x528   : > { %v1574_v23 = vrot.slane %v1567_v19, %v4457_v24 }
 0x529   : > { %v1581_v31 = vshrl.u32 %v1525_v21, 16  ;;  %v1589_v43 = vshrl.u32 %v1526_v34, 16 }
 0x52a   : > { %v1575_v26 = vcombine.low %v1566_v22, %v1574_v23  ;;  %v1576_v28 = vcombine.high %v1566_v22, %v1574_v23 }
 0x52c   : > { %v1579_v30 = vpack.i.b16 %v1575_v26, %v1525_v21  ;;  %v1582_v33 = vshrl.u32 %v1575_v26, 16  ;;  %v1590_v39 = vshrl.u32 %v1576_v28, 16  ;;  %v1587_v41 = vpack.i.b16 %v1576_v28, %v1526_v34 }
 0x52e   : > { %3602 = vmatpush3.bf16.msra.mxu0 %v1579_v30  ;;  %v1583_v38 = vpack.i.b16 %v1582_v33, %v1581_v31  ;;  %v3914_v44 = vpop.eup %3913  ;;  %v1591_v32 = vpack.i.b16 %v1590_v39, %v1589_v43 }
 0x52f   : > { %3613 = vmatprep.subr.bf16.mxu0 %v4162_v4  ;;  %v1870_v42 = vmul.f32 %v3914_v44, %v4582_v54  ;;  %v3798_v54 = vld [vmem:[#allocation7 + $0x30] sm:$0xff]  }
 0x530   : > { %3608 = vmatpush3.bf16.msra.mxu1 %v1583_v38  ;;  %v3916_v47 = vpop.eup %3915 }
 0x531   : > { %3604 = vmatmul.mubr.msk.bf16.vlgmr.msra.gmra.mxu0 %vm1782_vm2, %v1871_v40  ;;  %3619 = vmatprep.subr.bf16.mxu1 %v4162_v4  ;;  %v1869_v45 = vmul.f32 %v3916_v47, %v4578_v52  ;;  %v3797_v52 = vld [vmem:[#allocation7 + $0x38] sm:$0xff]  }
 0x532   : > { %3614 = vmatpush3.bf16.msra.mxu0 %v1587_v41  ;;  %3615 = vmatprep.mubr.msk.bf16.mxu0 %vm4164_vm0, %v4162_v4  ;;  %v3918_v49 = vpop.eup %3917 }
 0x533   : > { %3610 = vmatmul.mubr.msk.bf16.vlgmr.msra.gmra.mxu1 %vm1782_vm2, %v1872_v37  ;;  %3625 = vmatprep.subr.bf16.mxu0 %v4162_v4  ;;  %v1874_v46 = vpack.c.bf16 %v1870_v42, %v1869_v45  ;;  %v1868_v55 = vmul.f32 %v3918_v49, %v4574_v50  ;;  %v3801_v50 = vld [vmem:[#allocation7 + $0x18] sm:$0xff]  }
 0x534   : > { %3620 = vmatpush3.bf16.msra.mxu1 %v1591_v32  ;;  %3621 = vmatprep.mubr.msk.bf16.mxu1 %vm4164_vm0, %v4162_v4 }
 0x53b   : > { %3622 = vmatmul.mubr.msk.bf16.vlgmr.msra.gmra.mxu1 %vm1782_vm2, %v1874_v46 }
 0x53c   : > { %2757 = vmatprep.mubr.bf16.mxu1 %v4163_v27 }
 0x545   : > { %v1845_v48 = vpop.xlane.xlu1 %1844 }
 0x546   : > { %3919 = vrcp.f32 %v1845_v48 }
 0x553   : > { %v3920_v51 = vpop.eup %3919 }
 0x554   : > { %v1867_v53 = vmul.f32 %v3920_v51, %v4589_v58  ;;  %v3802_v58 = vld [vmem:[#allocation7 + $0x10] sm:$0xff]  }
 0x556   : > { %v1873_v56 = vpack.c.bf16 %v1868_v55, %v1867_v53 }
 0x558   : > { %3616 = vmatmul.mubr.msk.bf16.vlgmr.msra.gmra.mxu0 %vm1782_vm2, %v1873_v56 }
 0x559   : > { %3641 = vmatprep.mubr.msk.bf16.mxu0 %vm4164_vm0, %v4162_v4  ;;  %3626 = vmatpush3.bf16.msra.mxu0 %v3797_v52 }
 0x55a   : > { %3627 = vmatprep.subr.bf16.mxu0 %v4162_v4 }
 0x55d   : > { %3628 = vmatpush3.bf16.msra.mxu0 %v3798_v54 }
 0x55e   : > { %3629 = vmatprep.subr.bf16.mxu0 %v4162_v4 }
 0x561   : > { %3630 = vmatpush3.bf16.msra.mxu0 %v3799_v59 }
 0x562   : > { %3631 = vmatprep.subr.bf16.mxu0 %v4162_v4 }
 0x565   : > { %3632 = vmatpush3.bf16.msra.mxu0 %v3800_v57 }
 0x566   : > { %3633 = vmatprep.subr.bf16.mxu0 %v4162_v4 }
 0x569   : > { %3634 = vmatpush3.bf16.msra.mxu0 %v3801_v50 }
 0x56a   : > { %3635 = vmatprep.subr.bf16.mxu0 %v4162_v4 }
 0x56d   : > { %3636 = vmatpush3.bf16.msra.mxu0 %v3802_v58 }
 0x56e   : > { %3637 = vmatprep.subr.bf16.mxu0 %v4162_v4 }
 0x5f1   : > { %v1912_v60 = vpop.f32.mrf.mxu0 }
 0x5f3   : > { %v3605_v61 = vpop.f32.mrf.mxu0  ;;  %v1956_v62 = vpop.f32.mrf.mxu1 }
 0x5f5   : > { %v1915_v63 = vpop.f32.mrf.mxu0  ;;  %v3611_v0 = vpop.f32.mrf.mxu1 }
 0x5f7   : > { %v3606_v1 = vpop.f32.mrf.mxu0  ;;  %v1959_v3 = vpop.f32.mrf.mxu1 }
 0x5f9   : > { %v3612_v6 = vpop.f32.mrf.mxu1 }
 0x5fa   : > { %v3803_v6 = vld [vmem:[#allocation7 + $0x8] sm:$0xff]  }
 0x5fb   : > { %v2044_v7 = vpop.f32.mrf.mxu1  ;;  %3638 = vmatpush3.bf16.msra.mxu0 %v3803_v6 }
 0x5fc   : > { %v2067_v11 = vcombine.low %v1956_v62, %v2044_v7  ;;  %v2068_v12 = vcombine.high %v1956_v62, %v2044_v7  ;;  %3639 = vmatprep.subr.bf16.mxu0 %v4162_v4 }
 0x5fd   : > { %v3623_v9 = vpop.f32.mrf.mxu1 }
 0x5fe   : > { %v2075_v18 = vrot.slane %v2067_v11, %v4451_v14  ;;  %v2082_v19 = vrot.slane %v2068_v12, %v4451_v14 }
 0x5ff   : > { %v2047_v2 = vpop.f32.mrf.mxu1 }
 0x600   : > { %v2135_v22 = vcombine.low %v1959_v3, %v2047_v2  ;;  %v2136_v23 = vcombine.high %v1959_v3, %v2047_v2 }
 0x601   : > { %v3624_v10 = vpop.f32.mrf.mxu1 }
 0x602   : > { %v2143_v40 = vrot.slane %v2135_v22, %v4451_v14  ;;  %v2150_v8 = vrot.slane %v2136_v23, %v4451_v14  ;;  %v3804_v22 = vld [vmem:[#allocation7] sm:$0xff]  }
 0x603   : > { %3640 = vmatpush3.bf16.msra.mxu0 %v3804_v22  ;;  %v3834_v22 = vld [vmem:[#allocation8 + $0x6c] ss:$16 sps:$4 sm:$0xff]  }
 0x618   : > { %v2000_v13 = vpop.f32.mrf.mxu0 }
 0x619   : > { %v2051_v15 = vcombine.low %v1912_v60, %v2000_v13  ;;  %v2052_v16 = vcombine.high %v1912_v60, %v2000_v13 }
 0x61a   : > { %v3617_v17 = vpop.f32.mrf.mxu0 }
 0x61b   : > { %v2059_v20 = vrot.slane %v2051_v15, %v4451_v14  ;;  %v2066_v21 = vrot.slane %v2052_v16, %v4451_v14 }
 0x61c   : > { %v2003_v25 = vpop.f32.mrf.mxu0 }
 0x61d   : > { %v2083_v26 = vcombine.low %v2059_v20, %v2075_v18  ;;  %v2084_v28 = vcombine.high %v2059_v20, %v2075_v18  ;;  %v2099_v29 = vcombine.low %v2066_v21, %v2082_v19  ;;  %v2100_v30 = vcombine.high %v2066_v21, %v2082_v19 }
 0x61e   : > { %v2119_v31 = vcombine.low %v1915_v63, %v2003_v25  ;;  %v2120_v33 = vcombine.high %v1915_v63, %v2003_v25  ;;  %v3618_v34 = vpop.f32.mrf.mxu0 }
 0x61f   : > { %v2091_v35 = vrot.slane %v2083_v26, %v4457_v24  ;;  %v2098_v36 = vrot.slane %v2084_v28, %v4457_v24  ;;  %v2107_v38 = vrot.slane %v2099_v29, %v4457_v24  ;;  %v2114_v39 = vrot.slane %v2100_v30, %v4457_v24 }
 0x620   : > { %v2127_v41 = vrot.slane %v2119_v31, %v4451_v14  ;;  %v2134_v43 = vrot.slane %v2120_v33, %v4451_v14 }
 0x621   : > { %v2187_v37 = vcombine.low %v2091_v35, %v2098_v36  ;;  %v3392_v44 = vcombine.high %v2091_v35, %v2098_v36  ;;  %v2203_v32 = vcombine.low %v2107_v38, %v2114_v39  ;;  %v3393_v47 = vcombine.high %v2107_v38, %v2114_v39 }
 0x622   : > { %v2151_v42 = vcombine.low %v2127_v41, %v2143_v40  ;;  %v2152_v45 = vcombine.high %v2127_v41, %v2143_v40  ;;  %v2167_v46 = vcombine.low %v2134_v43, %v2150_v8  ;;  %v2168_v48 = vcombine.high %v2134_v43, %v2150_v8 }
 0x623   : > { %v2194_v49 = vrot.slane %v2187_v37, %v4451_v14  ;;  %v2202_v51 = vrot.slane %v3392_v44, %v4451_v14  ;;  %v2210_v53 = vrot.slane %v2203_v32, %v4451_v14  ;;  %v2218_v55 = vrot.slane %v3393_v47, %v4451_v14 }
 0x624   : > { %v2159_v56 = vrot.slane %v2151_v42, %v4457_v24  ;;  %v2166_v52 = vrot.slane %v2152_v45, %v4457_v24  ;;  %v2175_v54 = vrot.slane %v2167_v46, %v4457_v24  ;;  %v2182_v59 = vrot.slane %v2168_v48, %v4457_v24  ;;  %v3396_v48 = vld [vmem:[%s4794_s5] ss:$0 sm:$0xff] }
 0x625   : > { %v2220_v57 = vcombine.high %v2194_v49, %v2202_v51  ;;  %v2236_v50 = vcombine.high %v2210_v53, %v2218_v55  ;;  %v2219_v58 = vcombine.low %v2194_v49, %v2202_v51  ;;  %v2235_v60 = vcombine.low %v2210_v53, %v2218_v55  ;;  %v3941_v55 = vld [vmem:[%s4387_s30] sm:$0xff] }
 0x626   : > { %v2255_v61 = vcombine.low %v2159_v56, %v2166_v52  ;;  %v3394_v62 = vcombine.high %v2159_v56, %v2166_v52  ;;  %v2271_v63 = vcombine.low %v2175_v54, %v2182_v59  ;;  %v3395_v0 = vcombine.high %v2175_v54, %v2182_v59 }
 0x627   : > { %v2227_v1 = vrot.slane %v2219_v58, %v4457_v24  ;;  %v2243_v3 = vrot.slane %v2235_v60, %v4457_v24  ;;  %v2234_v11 = vrot.slane %v2220_v57, %v4457_v24  ;;  %v2250_v12 = vrot.slane %v2236_v50, %v4457_v24  ;;  %v3942_v57 = vld [vmem:[%s4387_s30 + $0x8] sm:$0xff]  ;;  %v3807_v58 = vld [vmem:[#allocation8 + $0xe4] ss:$16 sps:$4 sm:$0xff]  }
 0x628   : > { %v2262_v7 = vrot.slane %v2255_v61, %v4451_v14  ;;  %v2270_v9 = vrot.slane %v3394_v62, %v4451_v14  ;;  %v2278_v2 = vrot.slane %v2271_v63, %v4451_v14  ;;  %v2286_v10 = vrot.slane %v3395_v0, %v4451_v14  ;;  %v3808_v60 = vld [vmem:[#allocation8 + $0xe8] ss:$16 sps:$4 sm:$0xff]   ;;  %v3810_v61 = vld [vmem:[#allocation8 + $0xec] ss:$16 sps:$4 sm:$0xff]   ;;  %2725 = vmatprep.subr.bf16.mxu1 %v3807_v58  ;;  %v3858_v58 = vld [vmem:[#allocation10 + $0xf0] sm:$0xff]  }
 0x629   : > { %v2251_v13 = vcombine.low %v2227_v1, %v2243_v3  ;;  %v2253_v23 = vcombine.low %v2234_v11, %v2250_v12  ;;  %v2252_v26 = vcombine.high %v2227_v1, %v2243_v3  ;;  %v2254_v4 = vcombine.high %v2234_v11, %v2250_v12  ;;  %2768 = vmatprep.subr.bf16.mxu0 %v3810_v61  ;;  %v3811_v11 = vld [vmem:[#allocation8 + $0xc0] ss:$16 sps:$4 sm:$0xff]   ;;  %v3814_v12 = vld [vmem:[#allocation8 + $0xc8] ss:$16 sps:$4 sm:$0xff]  }
 0x62a   : > { %v2288_v15 = vcombine.high %v2262_v7, %v2270_v9  ;;  %v2304_v16 = vcombine.high %v2278_v2, %v2286_v10  ;;  %v2287_v17 = vcombine.low %v2262_v7, %v2270_v9  ;;  %v2303_v18 = vcombine.low %v2278_v2, %v2286_v10  ;;  %v3813_v2 = vld [vmem:[#allocation8 + $0xc4] ss:$16 sps:$4 sm:$0xff]   ;;  %v3816_v10 = vld [vmem:[#allocation8 + $0xcc] ss:$16 sps:$4 sm:$0xff]  }
 0x62b   : > { %v3860_v61 = vld [vmem:[#allocation10 + $0xb0] sm:$0xff]  }
 0x62c   : > { %v2302_v19 = vrot.slane %v2288_v15, %v4457_v24  ;;  %v2318_v20 = vrot.slane %v2304_v16, %v4457_v24  ;;  %v2295_v21 = vrot.slane %v2287_v17, %v4457_v24  ;;  %v2311_v14 = vrot.slane %v2303_v18, %v4457_v24  ;;  %v3822_v15 = vld [vmem:[#allocation8 + $0xac] ss:$16 sps:$4 sm:$0xff]   ;;  %v3817_v16 = vld [vmem:[#allocation8 + $0xa0] ss:$16 sps:$4 sm:$0xff]   ;;  %v3820_v17 = vld [vmem:[#allocation8 + $0xa8] ss:$16 sps:$4 sm:$0xff]  }
 0x62d   : > { %v3825_v18 = vld [vmem:[#allocation8 + $0x84] ss:$16 sps:$4 sm:$0xff]  }
 0x62e   : > { %v2321_v25 = vcombine.low %v2302_v19, %v2318_v20  ;;  %v2320_v28 = vcombine.high %v2295_v21, %v2311_v14  ;;  %v2319_v29 = vcombine.low %v2295_v21, %v2311_v14  ;;  %v2322_v33 = vcombine.high %v2302_v19, %v2318_v20  ;;  %v3828_v19 = vld [vmem:[#allocation8 + $0x8c] ss:$16 sps:$4 sm:$0xff]   ;;  %v3823_v20 = vld [vmem:[#allocation8 + $0x80] ss:$16 sps:$4 sm:$0xff]   ;;  %v3826_v21 = vld [vmem:[#allocation8 + $0x88] ss:$16 sps:$4 sm:$0xff]  }
 0x62f   : > { %v3831_v14 = vld [vmem:[#allocation8 + $0x64] ss:$16 sps:$4 sm:$0xff]  }
 0x630   : > { %v3755_v30 = vpack.i.bf16 %v2321_v25, %v2253_v23  ;;  %v3750_v31 = vpack.i.bf16 %v2320_v28, %v2252_v26  ;;  %v3760_v34 = vpack.i.bf16 %v2322_v33, %v2254_v4  ;;  %v3829_v23 = vld [vmem:[#allocation8 + $0x60] ss:$16 sps:$4 sm:$0xff]   ;;  %v3832_v25 = vld [vmem:[#allocation8 + $0x68] ss:$16 sps:$4 sm:$0xff]   ;;  %v3837_v26 = vld [vmem:[#allocation8 + $0x44] ss:$16 sps:$4 sm:$0xff]  }
 0x631   : > { %v3840_v28 = vld [vmem:[#allocation8 + $0x4c] ss:$16 sps:$4 sm:$0xff]   ;;  %v3841_v4 = vld [vmem:[#allocation8 + $0x20] ss:$16 sps:$4 sm:$0xff]  }
 0x632   : > { %3756 = vrot.lane.b32.xlu0 %v3755_v30, %s4165_s14  ;;  %3751 = vrot.lane.b32.xlu1 %v3750_v31, %s4167_s13  ;;  %v3838_v30 = vld [vmem:[#allocation8 + $0x48] ss:$16 sps:$4 sm:$0xff]   ;;  %v3843_v31 = vld [vmem:[#allocation8 + $0x24] ss:$16 sps:$4 sm:$0xff]   ;;  %v3846_v33 = vld [vmem:[#allocation8 + $0x2c] ss:$16 sps:$4 sm:$0xff]  }
 0x633   : > { %s489_s14 = scalar_lea.vmem [#allocation11], %s3340_s10  ;;  %s3478_s13 = sshll.u32 %s4259_s25, 8 }
 0x634   : > { %s4745_s4 = scalar_lea.hbm %s4801_s12, %s3478_s13  ;;  %s3205_s10 = scalar_lea.sflag [#allocation4], %s4381_s8 }
 0x635   : > { %s4170_s25 = smov [#allocation11]  }
 0x636   : > { %3761 = vrot.lane.b32.xlu1 %v3760_v34, %s4166_s19  ;;  %v3844_v34 = vld [vmem:[#allocation8 + $0x28] ss:$16 sps:$4 sm:$0xff]   ;;  %s3218_s19 = sshll.u32 %s489_s14, 4  ;;  %s4079_s15 = sshll.u32 %s4170_s25, 4  ;;  %s4740_s19 = int_to_ptr.vmem [resolvable:$true] %s3218_s19  ;;  %s4080_s15 = int_to_ptr.vmem [resolvable:$false] %s4079_s15 }
 0x637   : > { %s4075_s26 = scalar_lea.vmem %s4740_s19, 256  ;;  %s4081_s30 = scalar_lea.vmem %s4080_s15, 512 }
 0x638   : > { %p4076_p12 = scmp.ne.s32.totalorder %s4740_s19, %s4075_s26  ;;  %p4082_p5 = scmp.lt.s32.totalorder %s4740_s19, %s4080_s15 }
 0x639   : > { %p4083_p10 = scmp.lt.s32.totalorder %s4081_s30, %s4075_s26 }
 0x63a   : > { %p4077_p9 = pnand %p4076_p12, %p4831_p7 }
 0x63b   : > { %p4084_p1 = por %p4083_p10, %p4082_p5 }
 0x63c   : > { %p4078_p13 = pneg %p4077_p9 }
 0x63e   : > { %p4085_p2 = pnand %p4084_p1, %p4078_p13 }
 0x6a4   : > { %v3757_v35 = vpop.permute.xlu0 %3756  ;;  %v3752_v24 = vpop.permute.xlu1 %3751 }
 0x6a5   : > { %v3754_v36 = vunpack.i.h.bf16 %v3752_v24  ;;  %v3753_v38 = vunpack.i.l.bf16 %v3752_v24  ;;  %v3759_v39 = vunpack.i.h.bf16 %v3757_v35  ;;  %v3758_v40 = vunpack.i.l.bf16 %v3757_v35  ;;  %v3849_v35 = vld [vmem:[#allocation8 + $0x4] ss:$16 sps:$4 sm:$0xff]   ;;  %v3852_v24 = vld [vmem:[#allocation8 + $0xc] ss:$16 sps:$4 sm:$0xff]  }
 0x6a7   : > { %v2347_v8 = vsel %vm1593_vm1, %v2251_v13, %v3753_v38  ;;  %v2348_v41 = vsel %vm1593_vm1, %v2319_v29, %v3754_v36  ;;  %v3819_v13 = vld [vmem:[#allocation8 + $0xa4] ss:$16 sps:$4 sm:$0xff]   ;;  %v3835_v29 = vld [vmem:[#allocation8 + $0x40] ss:$16 sps:$4 sm:$0xff]   ;;  %v3850_v38 = vld [vmem:[#allocation8 + $0x8] ss:$16 sps:$4 sm:$0xff]  }
 0x6a8   : > { %v3762_v43 = vpop.permute.xlu1 %3761  ;;  %v2350_v32 = vsel %vm2349_vm3, %v2347_v8, %v3758_v40  ;;  %v2351_v47 = vsel %vm2349_vm3, %v2348_v41, %v3759_v39  ;;  %v3847_v36 = vld [vmem:[#allocation8] ss:$16 sps:$4 sm:$0xff]  }
 0x6a9   : > { %v3764_v37 = vunpack.i.h.bf16 %v3762_v43  ;;  %v3763_v44 = vunpack.i.l.bf16 %v3762_v43 }
 0x6ab   : > { %v2353_v42 = vsel %vm2352_vm4, %v2350_v32, %v3763_v44  ;;  %v2354_v45 = vsel %vm2352_vm4, %v2351_v47, %v3764_v37  ;;  %v3405_v47 = vld [vmem:[%s4795_s6] ss:$0 sm:$0xff] }
 0x6ac   : > { %v2355_v46 = vpack.c.bf16 %v2354_v45, %v2353_v42 }
 0x6ae   : > { %3642 = vmatmul.mubr.bf16.vlgmr.msra.gmra.mxu0 %v2355_v46 }
 0x6af   : > { %2800 = vmatprep.mubr.bf16.mxu0 %v4163_v27  ;;  %v3805_v27 = vld [vmem:[#allocation8 + $0xe0] ss:$16 sps:$4 sm:$0xff]   ;;  %2769 = vmatpush1.bf16.msra.mxu0 %v3808_v60 }
 0x6b0   : > { %2726 = vmatpush1.bf16.msra.mxu1 %v3805_v27  ;;  %2770 = vmatprep.subr.bf16.mxu0 %v3816_v10  ;;  %v3857_v27 = vld [vmem:[#allocation10 + $0x70] sm:$0xff]   ;;  %v3870_v10 = vld [vmem:[#allocation10 + $0xd8] sm:$0xff]  }
 0x6b1   : > { %2727 = vmatprep.subr.bf16.mxu1 %v3813_v2  ;;  %v3859_v60 = vld [vmem:[#allocation10 + $0x30] sm:$0xff]   ;;  %v3869_v2 = vld [vmem:[#allocation10 + $0x58] sm:$0xff]  }
 0x6b3   : > { %2771 = vmatpush1.bf16.msra.mxu0 %v3814_v12  ;;  %v3872_v12 = vld [vmem:[#allocation10 + $0x98] sm:$0xff]  }
 0x6b4   : > { %2728 = vmatpush1.bf16.msra.mxu1 %v3811_v11  ;;  %2772 = vmatprep.subr.bf16.mxu0 %v3822_v15  ;;  %v3871_v11 = vld [vmem:[#allocation10 + $0x18] sm:$0xff]   ;;  %v3874_v15 = vld [vmem:[#allocation10 + $0xd0] sm:$0xff]  }
 0x6b5   : > { %2729 = vmatprep.subr.bf16.mxu1 %v3819_v13  ;;  %v3873_v13 = vld [vmem:[#allocation10 + $0x50] sm:$0xff]  }
 0x6b7   : > { %2773 = vmatpush1.bf16.msra.mxu0 %v3820_v17  ;;  %v3876_v17 = vld [vmem:[#allocation10 + $0x90] sm:$0xff]  }
 0x6b8   : > { %2730 = vmatpush1.bf16.msra.mxu1 %v3817_v16  ;;  %2774 = vmatprep.subr.bf16.mxu0 %v3828_v19  ;;  %v3875_v16 = vld [vmem:[#allocation10 + $0x10] sm:$0xff]   ;;  %v3878_v19 = vld [vmem:[#allocation10 + $0xc8] sm:$0xff]  }
 0x6b9   : > { %2731 = vmatprep.subr.bf16.mxu1 %v3825_v18  ;;  %v3877_v18 = vld [vmem:[#allocation10 + $0x48] sm:$0xff]  }
 0x6bb   : > { %2775 = vmatpush1.bf16.msra.mxu0 %v3826_v21  ;;  %v3880_v21 = vld [vmem:[#allocation10 + $0x88] sm:$0xff]  }
 0x6bc   : > { %2732 = vmatpush1.bf16.msra.mxu1 %v3823_v20  ;;  %2776 = vmatprep.subr.bf16.mxu0 %v3834_v22  ;;  %v3879_v20 = vld [vmem:[#allocation10 + $0x8] sm:$0xff]   ;;  %v3882_v22 = vld [vmem:[#allocation10 + $0xc0] sm:$0xff]  }
 0x6bd   : > { %2733 = vmatprep.subr.bf16.mxu1 %v3831_v14  ;;  %v3881_v14 = vld [vmem:[#allocation10 + $0x40] sm:$0xff]  }
 0x6bf   : > { %2777 = vmatpush1.bf16.msra.mxu0 %v3832_v25  ;;  %v3884_v25 = vld [vmem:[#allocation10 + $0x80] sm:$0xff]  }
 0x6c0   : > { %2734 = vmatpush1.bf16.msra.mxu1 %v3829_v23  ;;  %2778 = vmatprep.subr.bf16.mxu0 %v3840_v28  ;;  %v3883_v23 = vld [vmem:[#allocation10] sm:$0xff]   ;;  %v2555_v28 = vsub.s32 2, %v4444_v5 }
 0x6c1   : > { %2735 = vmatprep.subr.bf16.mxu1 %v3837_v26  ;;  %v2547_v26 = vsub.s32 0, %v4444_v5 }
 0x6c3   : > { %2779 = vmatpush1.bf16.msra.mxu0 %v3838_v30  ;;  %v2551_v30 = vsub.s32 1, %v4444_v5 }
 0x6c4   : > { %2736 = vmatpush1.bf16.msra.mxu1 %v3835_v29  ;;  %2780 = vmatprep.subr.bf16.mxu0 %v3846_v33  ;;  %v2543_v29 = vld [vmem:[%s4798_s9] sm:$0xf] }
 0x6c5   : > { %2737 = vmatprep.subr.bf16.mxu1 %v3843_v31  ;;  %v2559_v31 = vsub.s32 3, %v4444_v5  ;;  %v2548_v33 = vrot.slane %v2543_v29, %v2547_v26 }
 0x6c7   : > { %2781 = vmatpush1.bf16.msra.mxu0 %v3844_v34 }
 0x6c8   : > { %2738 = vmatpush1.bf16.msra.mxu1 %v3841_v4  ;;  %2782 = vmatprep.subr.bf16.mxu0 %v3852_v24  ;;  %v2556_v4 = vrot.slane %v2543_v29, %v2555_v28  ;;  %v2552_v24 = vrot.slane %v2543_v29, %v2551_v30 }
 0x6c9   : > { %2739 = vmatprep.subr.bf16.mxu1 %v3849_v35 }
 0x6cb   : > { %2783 = vmatpush1.bf16.msra.mxu0 %v3850_v38 }
 0x6cc   : > { %2740 = vmatpush1.bf16.msra.mxu1 %v3847_v36  ;;  %v2560_v36 = vrot.slane %v2543_v29, %v2559_v31 }
 0x76e   : > { %v2461_v49 = vpop.f32.mrf.mxu0 }
 0x76f   : > { %v2462_v51 = vadd.f32 %v3396_v48, %v2461_v49 }
 0x770   : > { %v3643_v53 = vpop.f32.mrf.mxu0 }
 0x771   : > { %v4701_v56 = vadd.f32 %v3941_v55, %v2462_v51 }
 0x772   : > { %v2464_v52 = vpop.f32.mrf.mxu0 }
 0x773   : > { %v2465_v54 = vadd.f32 %v3396_v48, %v2464_v52  ;;  %2472 = vadd.xlane.f32.xlu1 %v4701_v56  ;;  %v3406_v48 = vld [vmem:[%s4796_s7] ss:$0 sm:$0xff]  ;;  %v3853_v52 = vld [vmem:[#allocation10 + $0x78] sm:$0xff]  }
 0x774   : > { %v3644_v59 = vpop.f32.mrf.mxu0  ;;  %3513 = vmatprep.subr.bf16.mxu1 %v3853_v52 }
 0x775   : > { %v4705_v50 = vadd.f32 %v3942_v57, %v2465_v54  ;;  %v3854_v54 = vld [vmem:[#allocation10 + $0xf8] sm:$0xff]  }
 0x776   : > { %v3855_v59 = vld [vmem:[#allocation10 + $0x38] sm:$0xff]   ;;  %3535 = vmatprep.subr.bf16.mxu0 %v3854_v54 }
 0x777   : > { %2474 = vadd.xlane.f32.xlu0 %v4705_v50  ;;  %v3856_v57 = vld [vmem:[#allocation10 + $0xb8] sm:$0xff]  }
 0x7fc   : > { %v2473_v62 = vpop.xlane.xlu1 %2472 }
 0x7fd   : > { %v2476_v63 = vmul.f32 0.0078125, %v2473_v62  ;;  %v3861_v62 = vld [vmem:[#allocation10 + $0x68] sm:$0xff]  }
 0x7ff   : > { %v4709_v0 = vsub.f32 %v4701_v56, %v2476_v63  ;;  %v3862_v63 = vld [vmem:[#allocation10 + $0xe8] sm:$0xff]  }
 0x800   : > { %v2475_v1 = vpop.xlane.xlu0 %2474 }
 0x801   : > { %v2477_v3 = vmul.f32 0.0078125, %v2475_v1  ;;  %v2480_v6 = vmul.f32 %v4709_v0, %v4709_v0  ;;  %v3864_v1 = vld [vmem:[#allocation10 + $0xa8] sm:$0xff]  }
 0x803   : > { %v4714_v7 = vsub.f32 %v4705_v50, %v2477_v3  ;;  %2482 = vadd.xlane.f32.xlu0 %v2480_v6  ;;  %v3865_v3 = vld [vmem:[#allocation10 + $0x60] sm:$0xff]  }
 0x804   : > { %v3866_v6 = vld [vmem:[#allocation10 + $0xe0] sm:$0xff]  }
 0x805   : > { %v2481_v9 = vmul.f32 %v4714_v7, %v4714_v7 }
 0x807   : > { %2484 = vadd.xlane.f32.xlu1 %v2481_v9  ;;  %v3868_v9 = vld [vmem:[#allocation10 + $0xa0] sm:$0xff]  }
 0x88c   : > { %v2483_v39 = vpop.xlane.xlu0 %2482 }
 0x88d   : > { %v2486_v40 = vmul.f32 0.0078125, %v2483_v39 }
 0x88f   : > { %v2488_v8 = vadd.f32 1e-05, %v2486_v40 }
 0x890   : > { %v2485_v41 = vpop.xlane.xlu1 %2484 }
 0x891   : > { %3921 = vrsqrt.f32 %v2488_v8  ;;  %v2487_v43 = vmul.f32 0.0078125, %v2485_v41 }
 0x893   : > { %v2489_v37 = vadd.f32 1e-05, %v2487_v43 }
 0x895   : > { %3923 = vrsqrt.f32 %v2489_v37 }
 0x89e   : > { %v3922_v44 = vpop.eup %3921 }
 0x89f   : > { %v2492_v32 = vmul.f32 %v3922_v44, %v4709_v0  ;;  %v3863_v0 = vld [vmem:[#allocation10 + $0x28] sm:$0xff]  }
 0x8a1   : > { %v2500_v46 = vmul.f32 %v3405_v47, %v2492_v32 }
 0x8a2   : > { %v3924_v42 = vpop.eup %3923 }
 0x8a3   : > { %v2493_v45 = vmul.f32 %v3924_v42, %v4714_v7  ;;  %v2508_v51 = vadd.f32 %v3406_v48, %v2500_v46  ;;  %v3867_v7 = vld [vmem:[#allocation10 + $0x20] sm:$0xff]  }
 0x8a5   : > { %v2501_v49 = vmul.f32 %v3405_v47, %v2493_v45 }
 0x8a7   : > { %v2509_v53 = vadd.f32 %v3406_v48, %v2501_v49 }
 0x8a9   : > { %v2510_v55 = vpack.c.bf16 %v2509_v53, %v2508_v51 }
 0x8ab   : > { %2758 = vmatmul.mubr.bf16.vlgmr.msra.gmra.mxu1 %v2510_v55  ;;  %2801 = vmatmul.mubr.bf16.vlgmr.msra.gmra.mxu0 %v2510_v55 }
 0x8ac   : > { %3514 = vmatpush3.bf16.msra.mxu1 %v3855_v59  ;;  %3536 = vmatpush3.bf16.msra.mxu0 %v3856_v57 }
 0x8ad   : > { %3515 = vmatprep.subr.bf16.mxu1 %v3857_v27  ;;  %3537 = vmatprep.subr.bf16.mxu0 %v3858_v58 }
 0x8b0   : > { %3516 = vmatpush3.bf16.msra.mxu1 %v3859_v60  ;;  %3538 = vmatpush3.bf16.msra.mxu0 %v3860_v61 }
 0x8b1   : > { %3517 = vmatprep.subr.bf16.mxu1 %v3861_v62  ;;  %3539 = vmatprep.subr.bf16.mxu0 %v3862_v63 }
 0x8b4   : > { %3518 = vmatpush3.bf16.msra.mxu1 %v3863_v0  ;;  %3540 = vmatpush3.bf16.msra.mxu0 %v3864_v1 }
 0x8b5   : > { %3519 = vmatprep.subr.bf16.mxu1 %v3865_v3  ;;  %3541 = vmatprep.subr.bf16.mxu0 %v3866_v6 }
 0x8b8   : > { %3520 = vmatpush3.bf16.msra.mxu1 %v3867_v7  ;;  %3542 = vmatpush3.bf16.msra.mxu0 %v3868_v9 }
 0x8b9   : > { %3521 = vmatprep.subr.bf16.mxu1 %v3869_v2  ;;  %3543 = vmatprep.subr.bf16.mxu0 %v3870_v10 }
 0x8bc   : > { %3522 = vmatpush3.bf16.msra.mxu1 %v3871_v11  ;;  %3544 = vmatpush3.bf16.msra.mxu0 %v3872_v12 }
 0x8bd   : > { %3523 = vmatprep.subr.bf16.mxu1 %v3873_v13  ;;  %3545 = vmatprep.subr.bf16.mxu0 %v3874_v15 }
 0x8c0   : > { %3524 = vmatpush3.bf16.msra.mxu1 %v3875_v16  ;;  %3546 = vmatpush3.bf16.msra.mxu0 %v3876_v17 }
 0x8c1   : > { %3525 = vmatprep.subr.bf16.mxu1 %v3877_v18  ;;  %3547 = vmatprep.subr.bf16.mxu0 %v3878_v19 }
 0x8c4   : > { %3526 = vmatpush3.bf16.msra.mxu1 %v3879_v20  ;;  %3548 = vmatpush3.bf16.msra.mxu0 %v3880_v21 }
 0x8c5   : > { %3527 = vmatprep.subr.bf16.mxu1 %v3881_v14  ;;  %3549 = vmatprep.subr.bf16.mxu0 %v3882_v22 }
 0x8c8   : > { %3528 = vmatpush3.bf16.msra.mxu1 %v3883_v23  ;;  %3550 = vmatpush3.bf16.msra.mxu0 %v3884_v25 }
 0x96b   : > { %v2759_v34 = vpop.f32.mrf.mxu1  ;;  %v2802_v35 = vpop.f32.mrf.mxu0 }
 0x96c   : > { %v2760_v38 = vadd.f32 %v2759_v34, %v2548_v33  ;;  %v2803_v39 = vadd.f32 %v2802_v35, %v2556_v4 }
 0x96d   : > { %v2761_v40 = vpop.f32.mrf.mxu1  ;;  %v2804_v8 = vpop.f32.mrf.mxu0 }
 0x96e   : > { %v2819_v41 = vmul.f32 0.70710677, %v2760_v38  ;;  %v2821_v43 = vmul.f32 0.70710677, %v2803_v39  ;;  %v2762_v37 = vadd.f32 %v2761_v40, %v2552_v24  ;;  %v2805_v44 = vadd.f32 %v2804_v8, %v2560_v36 }
 0x96f   : > { %v2763_v32 = vpop.f32.mrf.mxu1  ;;  %v2806_v47 = vpop.f32.mrf.mxu0  ;;  %v2811_v63 = vmul.f32 0.5, %v2760_v38  ;;  %v2813_v21 = vmul.f32 0.5, %v2803_v39 }
 0x970   : > { %v2764_v42 = vadd.f32 %v2763_v32, %v2548_v33  ;;  %v2807_v45 = vadd.f32 %v2806_v47, %v2556_v4  ;;  %3925 = verf.f32 %v2819_v41  ;;  %v2820_v5 = vmul.f32 0.70710677, %v2762_v37 }
 0x971   : > { %v2765_v46 = vpop.f32.mrf.mxu1  ;;  %v2808_v48 = vpop.f32.mrf.mxu0  ;;  %3927 = verf.f32 %v2821_v43  ;;  %v2822_v49 = vmul.f32 0.70710677, %v2805_v44  ;;  %v2812_v0 = vmul.f32 0.5, %v2762_v37  ;;  %v2814_v17 = vmul.f32 0.5, %v2805_v44 }
 0x972   : > { %v2823_v51 = vmul.f32 0.70710677, %v2764_v42  ;;  %3929 = verf.f32 %v2820_v5  ;;  %v2825_v53 = vmul.f32 0.70710677, %v2807_v45  ;;  %v2766_v55 = vadd.f32 %v2765_v46, %v2552_v24  ;;  %v3439_v24 = vld [vmem:[%s4800_s11] ss:$0 sm:$0xff] }
 0x973   : > { %v2809_v52 = vadd.f32 %v2808_v48, %v2560_v36  ;;  %3931 = verf.f32 %v2822_v49  ;;  %v2815_v2 = vmul.f32 0.5, %v2764_v42  ;;  %v2817_v13 = vmul.f32 0.5, %v2807_v45 }
 0x974   : > { %3933 = verf.f32 %v2823_v51  ;;  %v2824_v54 = vmul.f32 0.70710677, %v2766_v55  ;;  %v2816_v15 = vmul.f32 0.5, %v2766_v55 }
 0x975   : > { %3935 = verf.f32 %v2825_v53  ;;  %v2826_v59 = vmul.f32 0.70710677, %v2809_v52  ;;  %v2818_v19 = vmul.f32 0.5, %v2809_v52 }
 0x976   : > { %3937 = verf.f32 %v2824_v54 }
 0x977   : > { %3939 = verf.f32 %v2826_v59 }
 0x97d   : > { %v3926_v57 = vpop.eup %3925 }
 0x97e   : > { %v3928_v27 = vpop.eup %3927  ;;  %v2835_v7 = vadd.f32 1.0, %v3926_v57 }
 0x97f   : > { %v3930_v58 = vpop.eup %3929  ;;  %v2837_v12 = vadd.f32 1.0, %v3928_v27 }
 0x980   : > { %v3932_v60 = vpop.eup %3931  ;;  %v2836_v1 = vadd.f32 1.0, %v3930_v58  ;;  %v2843_v25 = vmul.f32 %v2835_v7, %v2811_v63 }
 0x981   : > { %v3934_v61 = vpop.eup %3933  ;;  %v2838_v9 = vadd.f32 1.0, %v3932_v60  ;;  %v2845_v29 = vmul.f32 %v2837_v12, %v2813_v21 }
 0x982   : > { %v3936_v62 = vpop.eup %3935  ;;  %v2839_v3 = vadd.f32 1.0, %v3934_v61  ;;  %v2844_v14 = vmul.f32 %v2836_v1, %v2812_v0 }
 0x983   : > { %v3938_v6 = vpop.eup %3937  ;;  %v2841_v10 = vadd.f32 1.0, %v3936_v62  ;;  %v2846_v26 = vmul.f32 %v2838_v9, %v2814_v17 }
 0x984   : > { %v3940_v11 = vpop.eup %3939  ;;  %v2840_v16 = vadd.f32 1.0, %v3938_v6  ;;  %v2847_v18 = vmul.f32 %v2839_v3, %v2815_v2 }
 0x985   : > { %v2842_v20 = vadd.f32 1.0, %v3940_v11  ;;  %v2849_v22 = vmul.f32 %v2841_v10, %v2817_v13 }
 0x986   : > { %v2848_v23 = vmul.f32 %v2840_v16, %v2816_v15  ;;  %v2851_v31 = vpack.c.bf16 %v2847_v18, %v2843_v25 }
 0x987   : > { %v2850_v28 = vmul.f32 %v2842_v20, %v2818_v19  ;;  %v2853_v4 = vpack.c.bf16 %v2849_v22, %v2845_v29 }
 0x988   : > { %v2852_v30 = vpack.c.bf16 %v2848_v23, %v2844_v14 }
 0x989   : > { %v2854_v33 = vpack.c.bf16 %v2850_v28, %v2846_v26 }
 0x98a   : > { %3150 = vmatprep.mubr.bf16.mxu1 %v2852_v30 }
 0x98b   : > { %3191 = vmatprep.mubr.bf16.mxu0 %v2854_v33  ;;  %3151 = vmatmul.mubr.bf16.vlgmr.msra.gmra.mxu1 %v2851_v31 }
 0x98c   : > { %3192 = vmatmul.mubr.bf16.vlgmr.msra.gmra.mxu0 %v2853_v4 }
 0xa4b   : > { %v3529_v34 = vpop.f32.mrf.mxu1 }
 0xa4c   : > { %v3551_v35 = vpop.f32.mrf.mxu0 }
 0xa4d   : > { %v3530_v36 = vpop.f32.mrf.mxu1 }
 0xa4e   : > { %v3531_v38 = vadd.f32 %v3530_v36, %v3529_v34  ;;  %v3552_v39 = vpop.f32.mrf.mxu0 }
 0xa4f   : > { %v3532_v40 = vpop.f32.mrf.mxu1  ;;  %v3553_v41 = vadd.f32 %v3552_v39, %v3551_v35 }
 0xa50   : > { %v3153_v8 = vadd.f32 %v3531_v38, %v3439_v24  ;;  %v3554_v43 = vpop.f32.mrf.mxu0 }
 0xa51   : > { %v3533_v37 = vpop.f32.mrf.mxu1 }
 0xa52   : > { %v3194_v44 = vadd.f32 %v3553_v41, %v3153_v8  ;;  %v3534_v32 = vadd.f32 %v3533_v37, %v3532_v40  ;;  %v3555_v47 = vpop.f32.mrf.mxu0 }
 0xa53   : > { %v3556_v5 = vadd.f32 %v3555_v47, %v3554_v43 }
 0xa54   : > { %v3200_v42 = vadd.f32 %v3194_v44, %v4701_v56  ;;  %v3156_v45 = vadd.f32 %v3534_v32, %v3439_v24 }
 0xa56   : > { %3202 = vst [vmem:[%s489_s14] sm:$0xff] %v3200_v42  ;;  %v3197_v46 = vadd.f32 %v3556_v5, %v3156_v45 }
 0xa58   : > { %v3201_v48 = vadd.f32 %v3197_v46, %v4705_v50 }
 0xa5a   : > { %3203 = vst [vmem:[%s489_s14 + $0x8] sm:$0xff] %v3201_v48 }
 0xa5b   : > { %4088 = shalt.err (!%p4085_p2)
}
 0xa5c   : > { %s4089_s3 = scalar_lea.hbm %s4745_s4, 256  ;;  %s4093_s17 = scalar_lea.hbm %s4801_s12, 512 }
 0xa5d   : > { %p4090_p3 = scmp.ne.s32.totalorder %s4745_s4, %s4089_s3  ;;  %p4094_p0 = scmp.lt.s32.totalorder %s4745_s4, %s4801_s12 }
 0xa5e   : > { %p4095_p11 = scmp.lt.s32.totalorder %s4093_s17, %s4089_s3 }
 0xa5f   : > { %p4091_p4 = pnand %p4090_p3, %p4831_p7 }
 0xa60   : > { %p4096_p6 = por %p4095_p11, %p4094_p0 }
 0xa61   : > { %p4092_p8 = pneg %p4091_p4 }
 0xa63   : > { %p4097_p12 = pnand %p4096_p6, %p4092_p8 }
 0xa65   : > { %4100 = shalt.err (!%p4097_p12)
}
 0xa66   : > { %s4171_s16 = smov 128   ;;  %s4172_s20 = smov 8  }
 0xa67   : > { %3663 = dma.vmem_to_hbm [thread:$0]  (%p4831_p7), %s4740_s19, 256, %s4745_s4, %s3205_s10, %s4171_s16, %s4171_s16, %s4172_s20  }
 0xa68 PF: > { %s4832_s26 = sld [smem:[#allocation16_spill]]  ;;  %p4835_p13 = scmp.ge.s32.totalorder %s4147_s24, 2 }
 0xa69   : > { %s4833_s25 = sld [smem:[#allocation17_spill]] }
 0xa6e   : > { %s3233_s15 = sand.u32 1, %s4832_s26  }
 0xa6f   : > { %p4834_p9 = scmp.ne.s32.totalorder %s4833_s25, 0  ;;  %s3234_s30 = scalar_lea.sflag [#allocation4], %s3233_s15 }
 0xa71   : > { %p3683_p5 = pnand %p4835_p13, %p4834_p9 }
 0xa73   : > { %p3684_p10 = pneg %p3683_p5 }
 0xa75   : > { %4130 = dma.done.wait (%p3684_p10), %s3234_s30, 256  }
 0xa76   : > { %4132 = vsyncadd (%p3684_p10), %s3234_s30, 4294967040  ;;  %p27_p1 = scmp.ge.s32.totalorder %s4326_s18, 4   ;;  %s4836_s21 = smov %s4139_s22 }
 0xa77   : > { %s4837_s22 = smov %s4143_s23  ;;  %s4838_s23 = smov %s4342_s28 }
 0xa78   : > { %s4839_s24 = smov %s4326_s18  ;;  %29 = sbr.rel (!%p27_p1) target bundleno = 12 (0xc), region = 129 }
 0xa7d   :  { %3239 = vsyncpa [#allocation3], 1 }
 0xa7e   :  { %3241 = vsyncpa [#allocation3 + $0x1], 1 }
 0xa7f   :  { %3242 = vsyncpa [#allocation6], 1 }
 0xa80   :  { %3243 = vsyncpa [#allocation9], 1 }
 0xa81   :  { %3244 = vsyncpa [#allocation4], 1 }
 0xa82   :  { %3246 = vsyncpa [#allocation4 + $0x1], 1 }

</bundles_post_ra>
